<compile_context>
chip_gen: v5e
topology: v5e:2x2
jax: 0.10.0
libtpu: 0.0.40
codegen_flags: <defaults>
</compile_context>

<pallas_src>
import jax
import jax.numpy as jnp
from jax import lax
from jax.experimental import pallas as pl
from jax.experimental.pallas import tpu as pltpu

SUBLANE = 8      # f32 sublane tile
TT_MAX = 32      # max timesteps per grid step (time block)
UNROLL = 8       # partial unroll of the in-kernel time loop


def _slstm_kernel(x_ref, wih0_ref, whh0_ref, w1_ref, b0_ref, b1_ref, y_ref,
                  xh_s, c0_s, c1_s, pg0_s):
    """One grid step == one (batch block, time block).

    Blocks are laid out as (TT*B_blk, C) row slabs (row = t*B_blk + b within the block).
    Recurrent state ([h0|h1] in xh_s, c0, c1) lives in VMEM scratch, is carried across the
    sequential time-block grid axis, and is re-initialized whenever t_block == 0.
    """
    t_blk = pl.program_id(1)

    @pl.when(t_blk == 0)
    def _():
        xh_s[...] = jnp.zeros_like(xh_s)
        c0_s[...] = jnp.zeros_like(c0_s)
        c1_s[...] = jnp.zeros_like(c1_s)

    Bb, H = c0_s.shape
    n_t = pg0_s.shape[0] // Bb          # == TT (static)

    # Hoist weight / bias loads (and the bias broadcast) out of the time loop.
    wih0 = wih0_ref[...].astype(jnp.float32)                        # (C, 4C)
    whh0 = whh0_ref[...].astype(jnp.float32)                        # (C, 4C)
    w1 = w1_ref[...].astype(jnp.float32)                            # (2C, 4C) == [Wih1; Whh1]
    b0 = b0_ref[...].astype(jnp.float32)                            # (1, 4C)
    b1 = jnp.broadcast_to(b1_ref[...].astype(jnp.float32), (Bb, 4 * H))

    # ---- layer-0 input projection for the whole time block: one big-M MXU matmul,
    # ---- hoisted out of the serial recurrence (per grid step, not per timestep).
    pg0_s[...] = jnp.dot(x_ref[...].astype(jnp.float32), wih0,
                         preferred_element_type=jnp.float32) + b0

    def act_split(gates):
        # Gate columns were permuted in the wrapper to [i | f | o | g]:
        # one sigmoid over 3H lanes + one tanh over H lanes (halved EUP work per step).
        sg = jax.nn.sigmoid(gates[:, :3 * H])
        g = jnp.tanh(gates[:, 3 * H:])
        return sg[:, :H], sg[:, H:2 * H], g, sg[:, 2 * H:]          # i, f, g, o

    def step(tt, carry):
        c0, c1 = carry
        row = pl.multiple_of(tt * Bb, Bb)                            # sublane-aligned offset

        # ---- layer 0: only the recurrent matmul is on the serial path ----
        g0 = pg0_s[pl.ds(row, Bb), :] + jnp.dot(
            xh_s[:, :H], whh0, preferred_element_type=jnp.float32)
        i0, f0, gg0, o0 = act_split(g0)
        c0 = f0 * c0 + i0 * gg0
        xh_s[:, :H] = o0 * jnp.tanh(c0)          # h0_new into the persistent [h0 | h1] buffer

        # ---- layer 1: fused input + recurrent matmul over [h0_new | h1_prev] ----
        g1 = jnp.dot(xh_s[...], w1, preferred_element_type=jnp.float32) + b1
        i1, f1, gg1, o1 = act_split(g1)
        c1 = f1 * c1 + i1 * gg1
        h1 = o1 * jnp.tanh(c1)
        xh_s[:, H:] = h1

        # skip=True: y_t = lstm_out_t + x_t
        y_ref[pl.ds(row, Bb), :] = (
            h1 + x_ref[pl.ds(row, Bb), :].astype(jnp.float32)).astype(y_ref.dtype)
        return (c0, c1)

    c0, c1 = lax.fori_loop(0, n_t, step, (c0_s[...], c1_s[...]),
                           unroll=min(UNROLL, n_t))
    c0_s[...] = c0
    c1_s[...] = c1


def _round_up(n, m):
    return -(-n // m) * m


def _is_multi_tc():
    """True on chips with >1 TensorCore per chip (v7x megacore)."""
    try:
        kind = jax.devices()[0].device_kind.lower()
    except Exception:
        return False
    return "v7" in kind


def _const_spec(shape):
    """Constant-index weight/bias tile: single-buffered (index_map never changes)."""
    idx = lambda b, t: (0, 0)
    try:
        return pl.BlockSpec(shape, idx, pipeline_mode=pl.Buffered(1))
    except Exception:   # older jax without pipeline_mode — fall back to default buffering
        return pl.BlockSpec(shape, idx)


def _vmem_limit_bytes(tt, b_blk, c):
    f32 = 4
    rows = tt * b_blk
    weights = (2 * c * 4 * c + 2 * c * 4 * c + 2 * 4 * c) * f32      # Wih0+Whh0, W1, biases
    streams = 2 * 2 * rows * c * f32                                 # x & y, double-buffered
    scratch = (b_blk * 2 * c + 2 * b_blk * c + rows * 4 * c) * f32   # [h0|h1], c0, c1, pre-gates
    est = weights + streams + scratch
    # Headroom for compiler temporaries; never below the default scoped limit, never above
    # v7x's 64 MiB physical VMEM.
    return int(min(max(2 * est + (4 << 20), 16 << 20), 64 << 20))


def _gate_perm(c):
    # PyTorch gate column order [i | f | g | o]  ->  kernel order [i | f | o | g]
    return jnp.concatenate([jnp.arange(0, 2 * c),
                            jnp.arange(3 * c, 4 * c),
                            jnp.arange(2 * c, 3 * c)])


@jax.jit
def slstm_forward(x, wih0_t, whh0_t, b0, wih1_t, whh1_t, b1):
    """x: (B, C, T) -> (B, C, T). Weights pre-transposed to (C, 4C); biases (1, 4C)."""
    B, C, T = x.shape

    # Permute gate columns once so the kernel can split sigmoid(3C) / tanh(C).
    perm = _gate_perm(C)
    wih0_p = wih0_t[:, perm]
    whh0_p = whh0_t[:, perm]
    w1_p = jnp.concatenate([wih1_t[:, perm], whh1_t[:, perm]], axis=0)   # (2C, 4C)
    b0_p = b0[:, perm]
    b1_p = b1[:, perm]

    x_tbc = jnp.transpose(x, (2, 0, 1))                              # (T, B, C) time-major

    # Pad batch to a sublane multiple and time to a multiple of the time block.
    # (LSTM is causal, so zero-padding time at the end and slicing y[:T] is exact.)
    B_pad = _round_up(max(B, SUBLANE), SUBLANE)
    TT = min(TT_MAX, _round_up(T, SUBLANE))
    T_pad = _round_up(T, TT)
    x_p = jnp.pad(x_tbc, ((0, T_pad - T), (0, B_pad - B), (0, 0)))

    # Batch blocking: split only on multi-TensorCore chips (v7x); one block on v5e/v6e.
    if _is_multi_tc() and B_pad % (2 * SUBLANE) == 0:
        B_blk = B_pad // 2
    else:
        B_blk = B_pad
    n_bblk = B_pad // B_blk

    # Lay out as (n_bblk, T_pad*B_blk, C): rows inside a batch block are (time, batch)-major
    # so a grid step sees one contiguous, sublane-aligned (TT*B_blk, C) slab (no in-kernel
    # reshapes needed for the big layer-0 projection matmul).
    x_blk = x_p.reshape(T_pad, n_bblk, B_blk, C)
    x_blk = jnp.transpose(x_blk, (1, 0, 2, 3)).reshape(n_bblk, T_pad * B_blk, C)

    rows = TT * B_blk
    grid = (n_bblk, T_pad // TT)

    y_blk = pl.pallas_call(
        _slstm_kernel,
        out_shape=jax.ShapeDtypeStruct((n_bblk, T_pad * B_blk, C), x.dtype),
        grid_spec=pltpu.PrefetchScalarGridSpec(
            num_scalar_prefetch=0,
            grid=grid,
            in_specs=[
                pl.BlockSpec((None, rows, C), lambda b, t: (b, t, 0)),   # x (proj + skip)
                _const_spec((C, 4 * C)),                                 # Wih0
                _const_spec((C, 4 * C)),                                 # Whh0
                _const_spec((2 * C, 4 * C)),                             # [Wih1; Whh1]
                _const_spec((1, 4 * C)),                                 # b_ih0 + b_hh0
                _const_spec((1, 4 * C)),                                 # b_ih1 + b_hh1
            ],
            out_specs=pl.BlockSpec((None, rows, C), lambda b, t: (b, t, 0)),
            scratch_shapes=[
                pltpu.VMEM((B_blk, 2 * C), jnp.float32),   # [h0 | h1] persistent state
                pltpu.VMEM((B_blk, C), jnp.float32),       # c0
                pltpu.VMEM((B_blk, C), jnp.float32),       # c1
                pltpu.VMEM((rows, 4 * C), jnp.float32),    # layer-0 pre-gates (per block)
            ],
        ),
        compiler_params=pltpu.CompilerParams(
            # batch blocks independent -> parallel (megacore); time is a recurrence.
            dimension_semantics=("parallel", "arbitrary"),
            vmem_limit_bytes=_vmem_limit_bytes(TT, B_blk, C),
        ),
    )(x_blk, wih0_p, whh0_p, w1_p, b0_p, b1_p)

    # Un-block, strip padding, restore (B, C, T).
    y = y_blk.reshape(n_bblk, T_pad, B_blk, C)
    y = jnp.transpose(y, (1, 0, 2, 3)).reshape(T_pad, B_pad, C)
    y = y[:T, :B]
    return jnp.transpose(y, (1, 2, 0))


def init_slstm_params(key, dim, num_layers=2):
    """Deterministic nn.LSTM-style init: U(-1/sqrt(H), 1/sqrt(H)); standard [i|f|g|o] order."""
    k = 1.0 / jnp.sqrt(jnp.float32(dim))
    params = []
    for _ in range(num_layers):
        key, k1, k2, k3, k4 = jax.random.split(key, 5)
        w_ih = jax.random.uniform(k1, (4 * dim, dim), jnp.float32, -k, k)
        w_hh = jax.random.uniform(k2, (4 * dim, dim), jnp.float32, -k, k)
        b_ih = jax.random.uniform(k3, (4 * dim,), jnp.float32, -k, k)
        b_hh = jax.random.uniform(k4, (4 * dim,), jnp.float32, -k, k)
        # Pre-transpose for x @ W.T == x @ W_t ; fold the two biases together.
        params.append((w_ih.T, w_hh.T, (b_ih + b_hh)[None, :]))
    return params


def slstm_reference(x, params):
    """Pure-JAX reference (lax.scan over time) for correctness checking."""
    x_tbc = jnp.transpose(x, (2, 0, 1))                              # (T, B, C)
    B, C = x_tbc.shape[1], x_tbc.shape[2]

    def cell(x_in, h, c, wih, whh, b):
        gates = x_in @ wih + h @ whh + b
        i = jax.nn.sigmoid(gates[:, 0 * C:1 * C])
        f = jax.nn.sigmoid(gates[:, 1 * C:2 * C])
        g = jnp.tanh(gates[:, 2 * C:3 * C])
        o = jax.nn.sigmoid(gates[:, 3 * C:4 * C])
        c_new = f * c + i * g
        return o * jnp.tanh(c_new), c_new

    seq = x_tbc
    for (wih, whh, b) in params:
        def step(carry, x_t):
            h, c = carry
            h, c = cell(x_t, h, c, wih, whh, b)
            return (h, c), h
        init = (jnp.zeros((B, C), jnp.float32), jnp.zeros((B, C), jnp.float32))
        _, seq = lax.scan(step, init, seq)
    y = seq + x_tbc                                                  # skip
    return jnp.transpose(y, (1, 2, 0))


if __name__ == "__main__":
    B, DIM, T = 2, 32, 8                                             # batch, dimension, seq length
    key = jax.random.PRNGKey(0)
    key, xk = jax.random.split(key)
    x = jax.random.normal(xk, (B, DIM, T), jnp.float32)

    params = init_slstm_params(key, DIM, num_layers=2)
    (wih0, whh0, b0), (wih1, whh1, b1) = params

    y = jax.block_until_ready(slstm_forward(x, wih0, whh0, b0, wih1, whh1, b1))
    y_ref = jax.block_until_ready(slstm_reference(x, params))

    assert y.shape == (B, DIM, T)
    max_err = jnp.max(jnp.abs(y - y_ref))
    assert jnp.allclose(y, y_ref, atol=1e-4, rtol=1e-4), f"max abs err {max_err}"

    print("KERNEL_OK")
</pallas_src>

<mosaic_0001>
module attributes {stable_mosaic.version = 11 : i64} {
  func.func @_slstm_kernel(%arg0: i32, %arg1: i32, %arg2: memref<1x64x32xf32, #tpu.memory_space<vmem>>, %arg3: memref<32x128xf32, #tpu.memory_space<vmem>>, %arg4: memref<32x128xf32, #tpu.memory_space<vmem>>, %arg5: memref<64x128xf32, #tpu.memory_space<vmem>>, %arg6: memref<1x128xf32, #tpu.memory_space<vmem>>, %arg7: memref<1x128xf32, #tpu.memory_space<vmem>>, %arg8: memref<1x64x32xf32, #tpu.memory_space<vmem>>, %arg9: memref<8x64xf32, #tpu.memory_space<vmem>>, %arg10: memref<8x32xf32, #tpu.memory_space<vmem>>, %arg11: memref<8x32xf32, #tpu.memory_space<vmem>>, %arg12: memref<64x128xf32, #tpu.memory_space<vmem>>) attributes {dimension_semantics = [#tpu.dimension_semantics<parallel>, #tpu.dimension_semantics<arbitrary>], iteration_bounds = array<i64: 1, 1>, scalar_prefetch = 0 : i64, scratch_operands = 4 : i64, tpu.core_type = #tpu.core_type<tc>, window_params = [{transform_indices = @transform_0, window_bounds = array<i64: 1, 64, 32>}, {pipeline_mode = #tpu.pipeline_mode<synchronous>, transform_indices = @transform_1, window_bounds = array<i64: 32, 128>}, {pipeline_mode = #tpu.pipeline_mode<synchronous>, transform_indices = @transform_2, window_bounds = array<i64: 32, 128>}, {pipeline_mode = #tpu.pipeline_mode<synchronous>, transform_indices = @transform_3, window_bounds = array<i64: 64, 128>}, {pipeline_mode = #tpu.pipeline_mode<synchronous>, transform_indices = @transform_4, window_bounds = array<i64: 1, 128>}, {pipeline_mode = #tpu.pipeline_mode<synchronous>, transform_indices = @transform_5, window_bounds = array<i64: 1, 128>}, {transform_indices = @transform_6, window_bounds = array<i64: 1, 64, 32>}]} {
    %c0_i32 = arith.constant 0 : i32
    %0 = arith.cmpi eq, %arg1, %c0_i32 : i32
    %1 = arith.extui %0 : i1 to i32
    %c0_i32_0 = arith.constant 0 : i32
    %2 = arith.cmpi ne, %1, %c0_i32_0 : i32
    scf.if %2 {
      %cst_167 = arith.constant 0.000000e+00 : f32
      %436 = vector.broadcast %cst_167 : f32 to vector<8x64xf32>
      %c0_168 = arith.constant 0 : index
      %c0_169 = arith.constant 0 : index
      %437 = vector.load %arg9[%c0_168, %c0_169] : memref<8x64xf32, #tpu.memory_space<vmem>>, vector<8x64xf32>
      tpu.vector_store %arg9[%c0_168, %c0_169], %436 {strides = array<i32>} : memref<8x64xf32, #tpu.memory_space<vmem>>, vector<8x64xf32>,
      %cst_170 = arith.constant 0.000000e+00 : f32
      %438 = vector.broadcast %cst_170 : f32 to vector<8x32xf32>
      %c0_171 = arith.constant 0 : index
      %c0_172 = arith.constant 0 : index
      %439 = vector.load %arg10[%c0_171, %c0_172] : memref<8x32xf32, #tpu.memory_space<vmem>>, vector<8x32xf32>
      tpu.vector_store %arg10[%c0_171, %c0_172], %438 {strides = array<i32>} : memref<8x32xf32, #tpu.memory_space<vmem>>, vector<8x32xf32>,
      %cst_173 = arith.constant 0.000000e+00 : f32
      %440 = vector.broadcast %cst_173 : f32 to vector<8x32xf32>
      %c0_174 = arith.constant 0 : index
      %c0_175 = arith.constant 0 : index
      %441 = vector.load %arg11[%c0_174, %c0_175] : memref<8x32xf32, #tpu.memory_space<vmem>>, vector<8x32xf32>
      tpu.vector_store %arg11[%c0_174, %c0_175], %440 {strides = array<i32>} : memref<8x32xf32, #tpu.memory_space<vmem>>, vector<8x32xf32>,
    } else {
    }
    %c0 = arith.constant 0 : index
    %c0_1 = arith.constant 0 : index
    %3 = vector.load %arg3[%c0, %c0_1] : memref<32x128xf32, #tpu.memory_space<vmem>>, vector<32x128xf32>
    %c0_2 = arith.constant 0 : index
    %c0_3 = arith.constant 0 : index
    %4 = vector.load %arg4[%c0_2, %c0_3] : memref<32x128xf32, #tpu.memory_space<vmem>>, vector<32x128xf32>
    %c0_4 = arith.constant 0 : index
    %c0_5 = arith.constant 0 : index
    %5 = vector.load %arg5[%c0_4, %c0_5] : memref<64x128xf32, #tpu.memory_space<vmem>>, vector<64x128xf32>
    %c0_6 = arith.constant 0 : index
    %c0_7 = arith.constant 0 : index
    %6 = vector.load %arg6[%c0_6, %c0_7] : memref<1x128xf32, #tpu.memory_space<vmem>>, vector<1x128xf32>
    %c0_8 = arith.constant 0 : index
    %c0_9 = arith.constant 0 : index
    %7 = vector.load %arg7[%c0_8, %c0_9] : memref<1x128xf32, #tpu.memory_space<vmem>>, vector<1x128xf32>
    %8 = vector.shape_cast %7 : vector<1x128xf32> to vector<1x128xf32>
    %9 = vector.broadcast %8 : vector<1x128xf32> to vector<8x128xf32>
    %c0_10 = arith.constant 0 : index
    %c0_11 = arith.constant 0 : index
    %c0_12 = arith.constant 0 : index
    %10 = vector.load %arg2[%c0_10, %c0_11, %c0_12] : memref<1x64x32xf32, #tpu.memory_space<vmem>>, vector<1x64x32xf32>
    %11 = vector.shape_cast %10 : vector<1x64x32xf32> to vector<64x32xf32>
    %cst = arith.constant dense<0.000000e+00> : vector<64x128xf32>
    %12 = tpu.matmul %11, %3, %cst {dimension_numbers = #tpu.dot_dimension_numbers<[1], [0], [0], [1], [0, 0, 1, 1], [], []>} : vector<64x32xf32>, vector<32x128xf32>, vector<64x128xf32> -> vector<64x128xf32>
    %13 = vector.broadcast %6 : vector<1x128xf32> to vector<64x128xf32>
    %14 = arith.addf %12, %13 : vector<64x128xf32>
    %c0_13 = arith.constant 0 : index
    %c0_14 = arith.constant 0 : index
    %15 = vector.load %arg12[%c0_13, %c0_14] : memref<64x128xf32, #tpu.memory_space<vmem>>, vector<64x128xf32>
    tpu.vector_store %arg12[%c0_13, %c0_14], %14 {strides = array<i32>} : memref<64x128xf32, #tpu.memory_space<vmem>>, vector<64x128xf32>,
    %c0_15 = arith.constant 0 : index
    %c0_16 = arith.constant 0 : index
    %16 = vector.load %arg10[%c0_15, %c0_16] : memref<8x32xf32, #tpu.memory_space<vmem>>, vector<8x32xf32>
    %c0_17 = arith.constant 0 : index
    %c0_18 = arith.constant 0 : index
    %17 = vector.load %arg11[%c0_17, %c0_18] : memref<8x32xf32, #tpu.memory_space<vmem>>, vector<8x32xf32>
    %c0_i32_19 = arith.constant 0 : i32
    %c8_i32 = arith.constant 8 : i32
    %18 = arith.muli %c0_i32_19, %c8_i32 : i32
    %19 = tpu.assume_multiple %18, 8 : i32
    %20 = arith.index_cast %19 : i32 to index
    %c0_20 = arith.constant 0 : index
    %21 = vector.load %arg12[%20, %c0_20] : memref<64x128xf32, #tpu.memory_space<vmem>>, vector<8x128xf32>
    %c0_21 = arith.constant 0 : index
    %c0_22 = arith.constant 0 : index
    %22 = vector.load %arg9[%c0_21, %c0_22] : memref<8x64xf32, #tpu.memory_space<vmem>>, vector<8x32xf32>
    %cst_23 = arith.constant dense<0.000000e+00> : vector<8x128xf32>
    %23 = tpu.matmul %22, %4, %cst_23 {dimension_numbers = #tpu.dot_dimension_numbers<[1], [0], [0], [1], [0, 0, 1, 1], [], []>} : vector<8x32xf32>, vector<32x128xf32>, vector<8x128xf32> -> vector<8x128xf32>
    %24 = arith.addf %21, %23 : vector<8x128xf32>
    %25 = vector.extract_strided_slice %24 {offsets = [0, 0], sizes = [8, 96], strides = [1, 1]} : vector<8x128xf32> to vector<8x96xf32>
    %26 = arith.negf %25 : vector<8x96xf32>
    %27 = math.exp %26 : vector<8x96xf32>
    %cst_24 = arith.constant 1.000000e+00 : f32
    %28 = vector.broadcast %cst_24 : f32 to vector<8x96xf32>
    %29 = arith.addf %28, %27 : vector<8x96xf32>
    %30 = arith.divf %28, %29 : vector<8x96xf32>
    %31 = vector.extract_strided_slice %24 {offsets = [0, 96], sizes = [8, 32], strides = [1, 1]} : vector<8x128xf32> to vector<8x32xf32>
    %32 = math.tanh %31 : vector<8x32xf32>
    %33 = vector.extract_strided_slice %30 {offsets = [0, 0], sizes = [8, 32], strides = [1, 1]} : vector<8x96xf32> to vector<8x32xf32>
    %34 = vector.extract_strided_slice %30 {offsets = [0, 32], sizes = [8, 32], strides = [1, 1]} : vector<8x96xf32> to vector<8x32xf32>
    %35 = vector.extract_strided_slice %30 {offsets = [0, 64], sizes = [8, 32], strides = [1, 1]} : vector<8x96xf32> to vector<8x32xf32>
    %36 = arith.mulf %34, %16 : vector<8x32xf32>
    %37 = arith.mulf %33, %32 : vector<8x32xf32>
    %38 = arith.addf %36, %37 : vector<8x32xf32>
    %39 = math.tanh %38 : vector<8x32xf32>
    %40 = arith.mulf %35, %39 : vector<8x32xf32>
    %c0_25 = arith.constant 0 : index
    %c0_26 = arith.constant 0 : index
    %41 = vector.load %arg9[%c0_25, %c0_26] : memref<8x64xf32, #tpu.memory_space<vmem>>, vector<8x32xf32>
    tpu.vector_store %arg9[%c0_25, %c0_26], %40 {strides = array<i32>} : memref<8x64xf32, #tpu.memory_space<vmem>>, vector<8x32xf32>,
    %c0_27 = arith.constant 0 : index
    %c0_28 = arith.constant 0 : index
    %42 = vector.load %arg9[%c0_27, %c0_28] : memref<8x64xf32, #tpu.memory_space<vmem>>, vector<8x64xf32>
    %cst_29 = arith.constant dense<0.000000e+00> : vector<8x128xf32>
    %43 = tpu.matmul %42, %5, %cst_29 {dimension_numbers = #tpu.dot_dimension_numbers<[1], [0], [0], [1], [0, 0, 1, 1], [], []>} : vector<8x64xf32>, vector<64x128xf32>, vector<8x128xf32> -> vector<8x128xf32>
    %44 = arith.addf %43, %9 : vector<8x128xf32>
    %45 = vector.extract_strided_slice %44 {offsets = [0, 0], sizes = [8, 96], strides = [1, 1]} : vector<8x128xf32> to vector<8x96xf32>
    %46 = arith.negf %45 : vector<8x96xf32>
    %47 = math.exp %46 : vector<8x96xf32>
    %cst_30 = arith.constant 1.000000e+00 : f32
    %48 = vector.broadcast %cst_30 : f32 to vector<8x96xf32>
    %49 = arith.addf %48, %47 : vector<8x96xf32>
    %50 = arith.divf %48, %49 : vector<8x96xf32>
    %51 = vector.extract_strided_slice %44 {offsets = [0, 96], sizes = [8, 32], strides = [1, 1]} : vector<8x128xf32> to vector<8x32xf32>
    %52 = math.tanh %51 : vector<8x32xf32>
    %53 = vector.extract_strided_slice %50 {offsets = [0, 0], sizes = [8, 32], strides = [1, 1]} : vector<8x96xf32> to vector<8x32xf32>
    %54 = vector.extract_strided_slice %50 {offsets = [0, 32], sizes = [8, 32], strides = [1, 1]} : vector<8x96xf32> to vector<8x32xf32>
    %55 = vector.extract_strided_slice %50 {offsets = [0, 64], sizes = [8, 32], strides = [1, 1]} : vector<8x96xf32> to vector<8x32xf32>
    %56 = arith.mulf %54, %17 : vector<8x32xf32>
    %57 = arith.mulf %53, %52 : vector<8x32xf32>
    %58 = arith.addf %56, %57 : vector<8x32xf32>
    %59 = math.tanh %58 : vector<8x32xf32>
    %60 = arith.mulf %55, %59 : vector<8x32xf32>
    %c0_31 = arith.constant 0 : index
    %c32 = arith.constant 32 : index
    %61 = vector.load %arg9[%c0_31, %c32] : memref<8x64xf32, #tpu.memory_space<vmem>>, vector<8x32xf32>
    tpu.vector_store %arg9[%c0_31, %c32], %60 {strides = array<i32>} : memref<8x64xf32, #tpu.memory_space<vmem>>, vector<8x32xf32>,
    %c0_32 = arith.constant 0 : index
    %62 = arith.index_cast %19 : i32 to index
    %c0_33 = arith.constant 0 : index
    %63 = vector.load %arg2[%c0_32, %62, %c0_33] : memref<1x64x32xf32, #tpu.memory_space<vmem>>, vector<1x8x32xf32>
    %64 = vector.shape_cast %63 : vector<1x8x32xf32> to vector<8x32xf32>
    %65 = arith.addf %60, %64 : vector<8x32xf32>
    %c0_34 = arith.constant 0 : index
    %66 = arith.index_cast %19 : i32 to index
    %c0_35 = arith.constant 0 : index
    %67 = vector.load %arg8[%c0_34, %66, %c0_35] : memref<1x64x32xf32, #tpu.memory_space<vmem>>, vector<1x8x32xf32>
    %68 = vector.shape_cast %67 : vector<1x8x32xf32> to vector<8x32xf32>
    %69 = vector.shape_cast %65 : vector<8x32xf32> to vector<1x8x32xf32>
    tpu.vector_store %arg8[%c0_34, %66, %c0_35], %69 {strides = array<i32>} : memref<1x64x32xf32, #tpu.memory_space<vmem>>, vector<1x8x32xf32>,
    %c1_i32 = arith.constant 1 : i32
    %c8_i32_36 = arith.constant 8 : i32
    %70 = arith.muli %c1_i32, %c8_i32_36 : i32
    %71 = tpu.assume_multiple %70, 8 : i32
    %72 = arith.index_cast %71 : i32 to index
    %c0_37 = arith.constant 0 : index
    %73 = vector.load %arg12[%72, %c0_37] : memref<64x128xf32, #tpu.memory_space<vmem>>, vector<8x128xf32>
    %c0_38 = arith.constant 0 : index
    %c0_39 = arith.constant 0 : index
    %74 = vector.load %arg9[%c0_38, %c0_39] : memref<8x64xf32, #tpu.memory_space<vmem>>, vector<8x32xf32>
    %cst_40 = arith.constant dense<0.000000e+00> : vector<8x128xf32>
    %75 = tpu.matmul %74, %4, %cst_40 {dimension_numbers = #tpu.dot_dimension_numbers<[1], [0], [0], [1], [0, 0, 1, 1], [], []>} : vector<8x32xf32>, vector<32x128xf32>, vector<8x128xf32> -> vector<8x128xf32>
    %76 = arith.addf %73, %75 : vector<8x128xf32>
    %77 = vector.extract_strided_slice %76 {offsets = [0, 0], sizes = [8, 96], strides = [1, 1]} : vector<8x128xf32> to vector<8x96xf32>
    %78 = arith.negf %77 : vector<8x96xf32>
    %79 = math.exp %78 : vector<8x96xf32>
    %cst_41 = arith.constant 1.000000e+00 : f32
    %80 = vector.broadcast %cst_41 : f32 to vector<8x96xf32>
    %81 = arith.addf %80, %79 : vector<8x96xf32>
    %82 = arith.divf %80, %81 : vector<8x96xf32>
    %83 = vector.extract_strided_slice %76 {offsets = [0, 96], sizes = [8, 32], strides = [1, 1]} : vector<8x128xf32> to vector<8x32xf32>
    %84 = math.tanh %83 : vector<8x32xf32>
    %85 = vector.extract_strided_slice %82 {offsets = [0, 0], sizes = [8, 32], strides = [1, 1]} : vector<8x96xf32> to vector<8x32xf32>
    %86 = vector.extract_strided_slice %82 {offsets = [0, 32], sizes = [8, 32], strides = [1, 1]} : vector<8x96xf32> to vector<8x32xf32>
    %87 = vector.extract_strided_slice %82 {offsets = [0, 64], sizes = [8, 32], strides = [1, 1]} : vector<8x96xf32> to vector<8x32xf32>
    %88 = arith.mulf %86, %38 : vector<8x32xf32>
    %89 = arith.mulf %85, %84 : vector<8x32xf32>
    %90 = arith.addf %88, %89 : vector<8x32xf32>
    %91 = math.tanh %90 : vector<8x32xf32>
    %92 = arith.mulf %87, %91 : vector<8x32xf32>
    %c0_42 = arith.constant 0 : index
    %c0_43 = arith.constant 0 : index
    %93 = vector.load %arg9[%c0_42, %c0_43] : memref<8x64xf32, #tpu.memory_space<vmem>>, vector<8x32xf32>
    tpu.vector_store %arg9[%c0_42, %c0_43], %92 {strides = array<i32>} : memref<8x64xf32, #tpu.memory_space<vmem>>, vector<8x32xf32>,
    %c0_44 = arith.constant 0 : index
    %c0_45 = arith.constant 0 : index
    %94 = vector.load %arg9[%c0_44, %c0_45] : memref<8x64xf32, #tpu.memory_space<vmem>>, vector<8x64xf32>
    %cst_46 = arith.constant dense<0.000000e+00> : vector<8x128xf32>
    %95 = tpu.matmul %94, %5, %cst_46 {dimension_numbers = #tpu.dot_dimension_numbers<[1], [0], [0], [1], [0, 0, 1, 1], [], []>} : vector<8x64xf32>, vector<64x128xf32>, vector<8x128xf32> -> vector<8x128xf32>
    %96 = arith.addf %95, %9 : vector<8x128xf32>
    %97 = vector.extract_strided_slice %96 {offsets = [0, 0], sizes = [8, 96], strides = [1, 1]} : vector<8x128xf32> to vector<8x96xf32>
    %98 = arith.negf %97 : vector<8x96xf32>
    %99 = math.exp %98 : vector<8x96xf32>
    %cst_47 = arith.constant 1.000000e+00 : f32
    %100 = vector.broadcast %cst_47 : f32 to vector<8x96xf32>
    %101 = arith.addf %100, %99 : vector<8x96xf32>
    %102 = arith.divf %100, %101 : vector<8x96xf32>
    %103 = vector.extract_strided_slice %96 {offsets = [0, 96], sizes = [8, 32], strides = [1, 1]} : vector<8x128xf32> to vector<8x32xf32>
    %104 = math.tanh %103 : vector<8x32xf32>
    %105 = vector.extract_strided_slice %102 {offsets = [0, 0], sizes = [8, 32], strides = [1, 1]} : vector<8x96xf32> to vector<8x32xf32>
    %106 = vector.extract_strided_slice %102 {offsets = [0, 32], sizes = [8, 32], strides = [1, 1]} : vector<8x96xf32> to vector<8x32xf32>
    %107 = vector.extract_strided_slice %102 {offsets = [0, 64], sizes = [8, 32], strides = [1, 1]} : vector<8x96xf32> to vector<8x32xf32>
    %108 = arith.mulf %106, %58 : vector<8x32xf32>
    %109 = arith.mulf %105, %104 : vector<8x32xf32>
    %110 = arith.addf %108, %109 : vector<8x32xf32>
    %111 = math.tanh %110 : vector<8x32xf32>
    %112 = arith.mulf %107, %111 : vector<8x32xf32>
    %c0_48 = arith.constant 0 : index
    %c32_49 = arith.constant 32 : index
    %113 = vector.load %arg9[%c0_48, %c32_49] : memref<8x64xf32, #tpu.memory_space<vmem>>, vector<8x32xf32>
    tpu.vector_store %arg9[%c0_48, %c32_49], %112 {strides = array<i32>} : memref<8x64xf32, #tpu.memory_space<vmem>>, vector<8x32xf32>,
    %c0_50 = arith.constant 0 : index
    %114 = arith.index_cast %71 : i32 to index
    %c0_51 = arith.constant 0 : index
    %115 = vector.load %arg2[%c0_50, %114, %c0_51] : memref<1x64x32xf32, #tpu.memory_space<vmem>>, vector<1x8x32xf32>
    %116 = vector.shape_cast %115 : vector<1x8x32xf32> to vector<8x32xf32>
    %117 = arith.addf %112, %116 : vector<8x32xf32>
    %c0_52 = arith.constant 0 : index
    %118 = arith.index_cast %71 : i32 to index
    %c0_53 = arith.constant 0 : index
    %119 = vector.load %arg8[%c0_52, %118, %c0_53] : memref<1x64x32xf32, #tpu.memory_space<vmem>>, vector<1x8x32xf32>
    %120 = vector.shape_cast %119 : vector<1x8x32xf32> to vector<8x32xf32>
    %121 = vector.shape_cast %117 : vector<8x32xf32> to vector<1x8x32xf32>
    tpu.vector_store %arg8[%c0_52, %118, %c0_53], %121 {strides = array<i32>} : memref<1x64x32xf32, #tpu.memory_space<vmem>>, vector<1x8x32xf32>,
    %c2_i32 = arith.constant 2 : i32
    %c8_i32_54 = arith.constant 8 : i32
    %122 = arith.muli %c2_i32, %c8_i32_54 : i32
    %123 = tpu.assume_multiple %122, 8 : i32
    %124 = arith.index_cast %123 : i32 to index
    %c0_55 = arith.constant 0 : index
    %125 = vector.load %arg12[%124, %c0_55] : memref<64x128xf32, #tpu.memory_space<vmem>>, vector<8x128xf32>
    %c0_56 = arith.constant 0 : index
    %c0_57 = arith.constant 0 : index
    %126 = vector.load %arg9[%c0_56, %c0_57] : memref<8x64xf32, #tpu.memory_space<vmem>>, vector<8x32xf32>
    %cst_58 = arith.constant dense<0.000000e+00> : vector<8x128xf32>
    %127 = tpu.matmul %126, %4, %cst_58 {dimension_numbers = #tpu.dot_dimension_numbers<[1], [0], [0], [1], [0, 0, 1, 1], [], []>} : vector<8x32xf32>, vector<32x128xf32>, vector<8x128xf32> -> vector<8x128xf32>
    %128 = arith.addf %125, %127 : vector<8x128xf32>
    %129 = vector.extract_strided_slice %128 {offsets = [0, 0], sizes = [8, 96], strides = [1, 1]} : vector<8x128xf32> to vector<8x96xf32>
    %130 = arith.negf %129 : vector<8x96xf32>
    %131 = math.exp %130 : vector<8x96xf32>
    %cst_59 = arith.constant 1.000000e+00 : f32
    %132 = vector.broadcast %cst_59 : f32 to vector<8x96xf32>
    %133 = arith.addf %132, %131 : vector<8x96xf32>
    %134 = arith.divf %132, %133 : vector<8x96xf32>
    %135 = vector.extract_strided_slice %128 {offsets = [0, 96], sizes = [8, 32], strides = [1, 1]} : vector<8x128xf32> to vector<8x32xf32>
    %136 = math.tanh %135 : vector<8x32xf32>
    %137 = vector.extract_strided_slice %134 {offsets = [0, 0], sizes = [8, 32], strides = [1, 1]} : vector<8x96xf32> to vector<8x32xf32>
    %138 = vector.extract_strided_slice %134 {offsets = [0, 32], sizes = [8, 32], strides = [1, 1]} : vector<8x96xf32> to vector<8x32xf32>
    %139 = vector.extract_strided_slice %134 {offsets = [0, 64], sizes = [8, 32], strides = [1, 1]} : vector<8x96xf32> to vector<8x32xf32>
    %140 = arith.mulf %138, %90 : vector<8x32xf32>
    %141 = arith.mulf %137, %136 : vector<8x32xf32>
    %142 = arith.addf %140, %141 : vector<8x32xf32>
    %143 = math.tanh %142 : vector<8x32xf32>
    %144 = arith.mulf %139, %143 : vector<8x32xf32>
    %c0_60 = arith.constant 0 : index
    %c0_61 = arith.constant 0 : index
    %145 = vector.load %arg9[%c0_60, %c0_61] : memref<8x64xf32, #tpu.memory_space<vmem>>, vector<8x32xf32>
    tpu.vector_store %arg9[%c0_60, %c0_61], %144 {strides = array<i32>} : memref<8x64xf32, #tpu.memory_space<vmem>>, vector<8x32xf32>,
    %c0_62 = arith.constant 0 : index
    %c0_63 = arith.constant 0 : index
    %146 = vector.load %arg9[%c0_62, %c0_63] : memref<8x64xf32, #tpu.memory_space<vmem>>, vector<8x64xf32>
    %cst_64 = arith.constant dense<0.000000e+00> : vector<8x128xf32>
    %147 = tpu.matmul %146, %5, %cst_64 {dimension_numbers = #tpu.dot_dimension_numbers<[1], [0], [0], [1], [0, 0, 1, 1], [], []>} : vector<8x64xf32>, vector<64x128xf32>, vector<8x128xf32> -> vector<8x128xf32>
    %148 = arith.addf %147, %9 : vector<8x128xf32>
    %149 = vector.extract_strided_slice %148 {offsets = [0, 0], sizes = [8, 96], strides = [1, 1]} : vector<8x128xf32> to vector<8x96xf32>
    %150 = arith.negf %149 : vector<8x96xf32>
    %151 = math.exp %150 : vector<8x96xf32>
    %cst_65 = arith.constant 1.000000e+00 : f32
    %152 = vector.broadcast %cst_65 : f32 to vector<8x96xf32>
    %153 = arith.addf %152, %151 : vector<8x96xf32>
    %154 = arith.divf %152, %153 : vector<8x96xf32>
    %155 = vector.extract_strided_slice %148 {offsets = [0, 96], sizes = [8, 32], strides = [1, 1]} : vector<8x128xf32> to vector<8x32xf32>
    %156 = math.tanh %155 : vector<8x32xf32>
    %157 = vector.extract_strided_slice %154 {offsets = [0, 0], sizes = [8, 32], strides = [1, 1]} : vector<8x96xf32> to vector<8x32xf32>
    %158 = vector.extract_strided_slice %154 {offsets = [0, 32], sizes = [8, 32], strides = [1, 1]} : vector<8x96xf32> to vector<8x32xf32>
    %159 = vector.extract_strided_slice %154 {offsets = [0, 64], sizes = [8, 32], strides = [1, 1]} : vector<8x96xf32> to vector<8x32xf32>
    %160 = arith.mulf %158, %110 : vector<8x32xf32>
    %161 = arith.mulf %157, %156 : vector<8x32xf32>
    %162 = arith.addf %160, %161 : vector<8x32xf32>
    %163 = math.tanh %162 : vector<8x32xf32>
    %164 = arith.mulf %159, %163 : vector<8x32xf32>
    %c0_66 = arith.constant 0 : index
    %c32_67 = arith.constant 32 : index
    %165 = vector.load %arg9[%c0_66, %c32_67] : memref<8x64xf32, #tpu.memory_space<vmem>>, vector<8x32xf32>
    tpu.vector_store %arg9[%c0_66, %c32_67], %164 {strides = array<i32>} : memref<8x64xf32, #tpu.memory_space<vmem>>, vector<8x32xf32>,
    %c0_68 = arith.constant 0 : index
    %166 = arith.index_cast %123 : i32 to index
    %c0_69 = arith.constant 0 : index
    %167 = vector.load %arg2[%c0_68, %166, %c0_69] : memref<1x64x32xf32, #tpu.memory_space<vmem>>, vector<1x8x32xf32>
    %168 = vector.shape_cast %167 : vector<1x8x32xf32> to vector<8x32xf32>
    %169 = arith.addf %164, %168 : vector<8x32xf32>
    %c0_70 = arith.constant 0 : index
    %170 = arith.index_cast %123 : i32 to index
    %c0_71 = arith.constant 0 : index
    %171 = vector.load %arg8[%c0_70, %170, %c0_71] : memref<1x64x32xf32, #tpu.memory_space<vmem>>, vector<1x8x32xf32>
    %172 = vector.shape_cast %171 : vector<1x8x32xf32> to vector<8x32xf32>
    %173 = vector.shape_cast %169 : vector<8x32xf32> to vector<1x8x32xf32>
    tpu.vector_store %arg8[%c0_70, %170, %c0_71], %173 {strides = array<i32>} : memref<1x64x32xf32, #tpu.memory_space<vmem>>, vector<1x8x32xf32>,
    %c3_i32 = arith.constant 3 : i32
    %c8_i32_72 = arith.constant 8 : i32
    %174 = arith.muli %c3_i32, %c8_i32_72 : i32
    %175 = tpu.assume_multiple %174, 8 : i32
    %176 = arith.index_cast %175 : i32 to index
    %c0_73 = arith.constant 0 : index
    %177 = vector.load %arg12[%176, %c0_73] : memref<64x128xf32, #tpu.memory_space<vmem>>, vector<8x128xf32>
    %c0_74 = arith.constant 0 : index
    %c0_75 = arith.constant 0 : index
    %178 = vector.load %arg9[%c0_74, %c0_75] : memref<8x64xf32, #tpu.memory_space<vmem>>, vector<8x32xf32>
    %cst_76 = arith.constant dense<0.000000e+00> : vector<8x128xf32>
    %179 = tpu.matmul %178, %4, %cst_76 {dimension_numbers = #tpu.dot_dimension_numbers<[1], [0], [0], [1], [0, 0, 1, 1], [], []>} : vector<8x32xf32>, vector<32x128xf32>, vector<8x128xf32> -> vector<8x128xf32>
    %180 = arith.addf %177, %179 : vector<8x128xf32>
    %181 = vector.extract_strided_slice %180 {offsets = [0, 0], sizes = [8, 96], strides = [1, 1]} : vector<8x128xf32> to vector<8x96xf32>
    %182 = arith.negf %181 : vector<8x96xf32>
    %183 = math.exp %182 : vector<8x96xf32>
    %cst_77 = arith.constant 1.000000e+00 : f32
    %184 = vector.broadcast %cst_77 : f32 to vector<8x96xf32>
    %185 = arith.addf %184, %183 : vector<8x96xf32>
    %186 = arith.divf %184, %185 : vector<8x96xf32>
    %187 = vector.extract_strided_slice %180 {offsets = [0, 96], sizes = [8, 32], strides = [1, 1]} : vector<8x128xf32> to vector<8x32xf32>
    %188 = math.tanh %187 : vector<8x32xf32>
    %189 = vector.extract_strided_slice %186 {offsets = [0, 0], sizes = [8, 32], strides = [1, 1]} : vector<8x96xf32> to vector<8x32xf32>
    %190 = vector.extract_strided_slice %186 {offsets = [0, 32], sizes = [8, 32], strides = [1, 1]} : vector<8x96xf32> to vector<8x32xf32>
    %191 = vector.extract_strided_slice %186 {offsets = [0, 64], sizes = [8, 32], strides = [1, 1]} : vector<8x96xf32> to vector<8x32xf32>
    %192 = arith.mulf %190, %142 : vector<8x32xf32>
    %193 = arith.mulf %189, %188 : vector<8x32xf32>
    %194 = arith.addf %192, %193 : vector<8x32xf32>
    %195 = math.tanh %194 : vector<8x32xf32>
    %196 = arith.mulf %191, %195 : vector<8x32xf32>
    %c0_78 = arith.constant 0 : index
    %c0_79 = arith.constant 0 : index
    %197 = vector.load %arg9[%c0_78, %c0_79] : memref<8x64xf32, #tpu.memory_space<vmem>>, vector<8x32xf32>
    tpu.vector_store %arg9[%c0_78, %c0_79], %196 {strides = array<i32>} : memref<8x64xf32, #tpu.memory_space<vmem>>, vector<8x32xf32>,
    %c0_80 = arith.constant 0 : index
    %c0_81 = arith.constant 0 : index
    %198 = vector.load %arg9[%c0_80, %c0_81] : memref<8x64xf32, #tpu.memory_space<vmem>>, vector<8x64xf32>
    %cst_82 = arith.constant dense<0.000000e+00> : vector<8x128xf32>
    %199 = tpu.matmul %198, %5, %cst_82 {dimension_numbers = #tpu.dot_dimension_numbers<[1], [0], [0], [1], [0, 0, 1, 1], [], []>} : vector<8x64xf32>, vector<64x128xf32>, vector<8x128xf32> -> vector<8x128xf32>
    %200 = arith.addf %199, %9 : vector<8x128xf32>
    %201 = vector.extract_strided_slice %200 {offsets = [0, 0], sizes = [8, 96], strides = [1, 1]} : vector<8x128xf32> to vector<8x96xf32>
    %202 = arith.negf %201 : vector<8x96xf32>
    %203 = math.exp %202 : vector<8x96xf32>
    %cst_83 = arith.constant 1.000000e+00 : f32
    %204 = vector.broadcast %cst_83 : f32 to vector<8x96xf32>
    %205 = arith.addf %204, %203 : vector<8x96xf32>
    %206 = arith.divf %204, %205 : vector<8x96xf32>
    %207 = vector.extract_strided_slice %200 {offsets = [0, 96], sizes = [8, 32], strides = [1, 1]} : vector<8x128xf32> to vector<8x32xf32>
    %208 = math.tanh %207 : vector<8x32xf32>
    %209 = vector.extract_strided_slice %206 {offsets = [0, 0], sizes = [8, 32], strides = [1, 1]} : vector<8x96xf32> to vector<8x32xf32>
    %210 = vector.extract_strided_slice %206 {offsets = [0, 32], sizes = [8, 32], strides = [1, 1]} : vector<8x96xf32> to vector<8x32xf32>
    %211 = vector.extract_strided_slice %206 {offsets = [0, 64], sizes = [8, 32], strides = [1, 1]} : vector<8x96xf32> to vector<8x32xf32>
    %212 = arith.mulf %210, %162 : vector<8x32xf32>
    %213 = arith.mulf %209, %208 : vector<8x32xf32>
    %214 = arith.addf %212, %213 : vector<8x32xf32>
    %215 = math.tanh %214 : vector<8x32xf32>
    %216 = arith.mulf %211, %215 : vector<8x32xf32>
    %c0_84 = arith.constant 0 : index
    %c32_85 = arith.constant 32 : index
    %217 = vector.load %arg9[%c0_84, %c32_85] : memref<8x64xf32, #tpu.memory_space<vmem>>, vector<8x32xf32>
    tpu.vector_store %arg9[%c0_84, %c32_85], %216 {strides = array<i32>} : memref<8x64xf32, #tpu.memory_space<vmem>>, vector<8x32xf32>,
    %c0_86 = arith.constant 0 : index
    %218 = arith.index_cast %175 : i32 to index
    %c0_87 = arith.constant 0 : index
    %219 = vector.load %arg2[%c0_86, %218, %c0_87] : memref<1x64x32xf32, #tpu.memory_space<vmem>>, vector<1x8x32xf32>
    %220 = vector.shape_cast %219 : vector<1x8x32xf32> to vector<8x32xf32>
    %221 = arith.addf %216, %220 : vector<8x32xf32>
    %c0_88 = arith.constant 0 : index
    %222 = arith.index_cast %175 : i32 to index
    %c0_89 = arith.constant 0 : index
    %223 = vector.load %arg8[%c0_88, %222, %c0_89] : memref<1x64x32xf32, #tpu.memory_space<vmem>>, vector<1x8x32xf32>
    %224 = vector.shape_cast %223 : vector<1x8x32xf32> to vector<8x32xf32>
    %225 = vector.shape_cast %221 : vector<8x32xf32> to vector<1x8x32xf32>
    tpu.vector_store %arg8[%c0_88, %222, %c0_89], %225 {strides = array<i32>} : memref<1x64x32xf32, #tpu.memory_space<vmem>>, vector<1x8x32xf32>,
    %c4_i32 = arith.constant 4 : i32
    %c8_i32_90 = arith.constant 8 : i32
    %226 = arith.muli %c4_i32, %c8_i32_90 : i32
    %227 = tpu.assume_multiple %226, 8 : i32
    %228 = arith.index_cast %227 : i32 to index
    %c0_91 = arith.constant 0 : index
    %229 = vector.load %arg12[%228, %c0_91] : memref<64x128xf32, #tpu.memory_space<vmem>>, vector<8x128xf32>
    %c0_92 = arith.constant 0 : index
    %c0_93 = arith.constant 0 : index
    %230 = vector.load %arg9[%c0_92, %c0_93] : memref<8x64xf32, #tpu.memory_space<vmem>>, vector<8x32xf32>
    %cst_94 = arith.constant dense<0.000000e+00> : vector<8x128xf32>
    %231 = tpu.matmul %230, %4, %cst_94 {dimension_numbers = #tpu.dot_dimension_numbers<[1], [0], [0], [1], [0, 0, 1, 1], [], []>} : vector<8x32xf32>, vector<32x128xf32>, vector<8x128xf32> -> vector<8x128xf32>
    %232 = arith.addf %229, %231 : vector<8x128xf32>
    %233 = vector.extract_strided_slice %232 {offsets = [0, 0], sizes = [8, 96], strides = [1, 1]} : vector<8x128xf32> to vector<8x96xf32>
    %234 = arith.negf %233 : vector<8x96xf32>
    %235 = math.exp %234 : vector<8x96xf32>
    %cst_95 = arith.constant 1.000000e+00 : f32
    %236 = vector.broadcast %cst_95 : f32 to vector<8x96xf32>
    %237 = arith.addf %236, %235 : vector<8x96xf32>
    %238 = arith.divf %236, %237 : vector<8x96xf32>
    %239 = vector.extract_strided_slice %232 {offsets = [0, 96], sizes = [8, 32], strides = [1, 1]} : vector<8x128xf32> to vector<8x32xf32>
    %240 = math.tanh %239 : vector<8x32xf32>
    %241 = vector.extract_strided_slice %238 {offsets = [0, 0], sizes = [8, 32], strides = [1, 1]} : vector<8x96xf32> to vector<8x32xf32>
    %242 = vector.extract_strided_slice %238 {offsets = [0, 32], sizes = [8, 32], strides = [1, 1]} : vector<8x96xf32> to vector<8x32xf32>
    %243 = vector.extract_strided_slice %238 {offsets = [0, 64], sizes = [8, 32], strides = [1, 1]} : vector<8x96xf32> to vector<8x32xf32>
    %244 = arith.mulf %242, %194 : vector<8x32xf32>
    %245 = arith.mulf %241, %240 : vector<8x32xf32>
    %246 = arith.addf %244, %245 : vector<8x32xf32>
    %247 = math.tanh %246 : vector<8x32xf32>
    %248 = arith.mulf %243, %247 : vector<8x32xf32>
    %c0_96 = arith.constant 0 : index
    %c0_97 = arith.constant 0 : index
    %249 = vector.load %arg9[%c0_96, %c0_97] : memref<8x64xf32, #tpu.memory_space<vmem>>, vector<8x32xf32>
    tpu.vector_store %arg9[%c0_96, %c0_97], %248 {strides = array<i32>} : memref<8x64xf32, #tpu.memory_space<vmem>>, vector<8x32xf32>,
    %c0_98 = arith.constant 0 : index
    %c0_99 = arith.constant 0 : index
    %250 = vector.load %arg9[%c0_98, %c0_99] : memref<8x64xf32, #tpu.memory_space<vmem>>, vector<8x64xf32>
    %cst_100 = arith.constant dense<0.000000e+00> : vector<8x128xf32>
    %251 = tpu.matmul %250, %5, %cst_100 {dimension_numbers = #tpu.dot_dimension_numbers<[1], [0], [0], [1], [0, 0, 1, 1], [], []>} : vector<8x64xf32>, vector<64x128xf32>, vector<8x128xf32> -> vector<8x128xf32>
    %252 = arith.addf %251, %9 : vector<8x128xf32>
    %253 = vector.extract_strided_slice %252 {offsets = [0, 0], sizes = [8, 96], strides = [1, 1]} : vector<8x128xf32> to vector<8x96xf32>
    %254 = arith.negf %253 : vector<8x96xf32>
    %255 = math.exp %254 : vector<8x96xf32>
    %cst_101 = arith.constant 1.000000e+00 : f32
    %256 = vector.broadcast %cst_101 : f32 to vector<8x96xf32>
    %257 = arith.addf %256, %255 : vector<8x96xf32>
    %258 = arith.divf %256, %257 : vector<8x96xf32>
    %259 = vector.extract_strided_slice %252 {offsets = [0, 96], sizes = [8, 32], strides = [1, 1]} : vector<8x128xf32> to vector<8x32xf32>
    %260 = math.tanh %259 : vector<8x32xf32>
    %261 = vector.extract_strided_slice %258 {offsets = [0, 0], sizes = [8, 32], strides = [1, 1]} : vector<8x96xf32> to vector<8x32xf32>
    %262 = vector.extract_strided_slice %258 {offsets = [0, 32], sizes = [8, 32], strides = [1, 1]} : vector<8x96xf32> to vector<8x32xf32>
    %263 = vector.extract_strided_slice %258 {offsets = [0, 64], sizes = [8, 32], strides = [1, 1]} : vector<8x96xf32> to vector<8x32xf32>
    %264 = arith.mulf %262, %214 : vector<8x32xf32>
    %265 = arith.mulf %261, %260 : vector<8x32xf32>
    %266 = arith.addf %264, %265 : vector<8x32xf32>
    %267 = math.tanh %266 : vector<8x32xf32>
    %268 = arith.mulf %263, %267 : vector<8x32xf32>
    %c0_102 = arith.constant 0 : index
    %c32_103 = arith.constant 32 : index
    %269 = vector.load %arg9[%c0_102, %c32_103] : memref<8x64xf32, #tpu.memory_space<vmem>>, vector<8x32xf32>
    tpu.vector_store %arg9[%c0_102, %c32_103], %268 {strides = array<i32>} : memref<8x64xf32, #tpu.memory_space<vmem>>, vector<8x32xf32>,
    %c0_104 = arith.constant 0 : index
    %270 = arith.index_cast %227 : i32 to index
    %c0_105 = arith.constant 0 : index
    %271 = vector.load %arg2[%c0_104, %270, %c0_105] : memref<1x64x32xf32, #tpu.memory_space<vmem>>, vector<1x8x32xf32>
    %272 = vector.shape_cast %271 : vector<1x8x32xf32> to vector<8x32xf32>
    %273 = arith.addf %268, %272 : vector<8x32xf32>
    %c0_106 = arith.constant 0 : index
    %274 = arith.index_cast %227 : i32 to index
    %c0_107 = arith.constant 0 : index
    %275 = vector.load %arg8[%c0_106, %274, %c0_107] : memref<1x64x32xf32, #tpu.memory_space<vmem>>, vector<1x8x32xf32>
    %276 = vector.shape_cast %275 : vector<1x8x32xf32> to vector<8x32xf32>
    %277 = vector.shape_cast %273 : vector<8x32xf32> to vector<1x8x32xf32>
    tpu.vector_store %arg8[%c0_106, %274, %c0_107], %277 {strides = array<i32>} : memref<1x64x32xf32, #tpu.memory_space<vmem>>, vector<1x8x32xf32>,
    %c5_i32 = arith.constant 5 : i32
    %c8_i32_108 = arith.constant 8 : i32
    %278 = arith.muli %c5_i32, %c8_i32_108 : i32
    %279 = tpu.assume_multiple %278, 8 : i32
    %280 = arith.index_cast %279 : i32 to index
    %c0_109 = arith.constant 0 : index
    %281 = vector.load %arg12[%280, %c0_109] : memref<64x128xf32, #tpu.memory_space<vmem>>, vector<8x128xf32>
    %c0_110 = arith.constant 0 : index
    %c0_111 = arith.constant 0 : index
    %282 = vector.load %arg9[%c0_110, %c0_111] : memref<8x64xf32, #tpu.memory_space<vmem>>, vector<8x32xf32>
    %cst_112 = arith.constant dense<0.000000e+00> : vector<8x128xf32>
    %283 = tpu.matmul %282, %4, %cst_112 {dimension_numbers = #tpu.dot_dimension_numbers<[1], [0], [0], [1], [0, 0, 1, 1], [], []>} : vector<8x32xf32>, vector<32x128xf32>, vector<8x128xf32> -> vector<8x128xf32>
    %284 = arith.addf %281, %283 : vector<8x128xf32>
    %285 = vector.extract_strided_slice %284 {offsets = [0, 0], sizes = [8, 96], strides = [1, 1]} : vector<8x128xf32> to vector<8x96xf32>
    %286 = arith.negf %285 : vector<8x96xf32>
    %287 = math.exp %286 : vector<8x96xf32>
    %cst_113 = arith.constant 1.000000e+00 : f32
    %288 = vector.broadcast %cst_113 : f32 to vector<8x96xf32>
    %289 = arith.addf %288, %287 : vector<8x96xf32>
    %290 = arith.divf %288, %289 : vector<8x96xf32>
    %291 = vector.extract_strided_slice %284 {offsets = [0, 96], sizes = [8, 32], strides = [1, 1]} : vector<8x128xf32> to vector<8x32xf32>
    %292 = math.tanh %291 : vector<8x32xf32>
    %293 = vector.extract_strided_slice %290 {offsets = [0, 0], sizes = [8, 32], strides = [1, 1]} : vector<8x96xf32> to vector<8x32xf32>
    %294 = vector.extract_strided_slice %290 {offsets = [0, 32], sizes = [8, 32], strides = [1, 1]} : vector<8x96xf32> to vector<8x32xf32>
    %295 = vector.extract_strided_slice %290 {offsets = [0, 64], sizes = [8, 32], strides = [1, 1]} : vector<8x96xf32> to vector<8x32xf32>
    %296 = arith.mulf %294, %246 : vector<8x32xf32>
    %297 = arith.mulf %293, %292 : vector<8x32xf32>
    %298 = arith.addf %296, %297 : vector<8x32xf32>
    %299 = math.tanh %298 : vector<8x32xf32>
    %300 = arith.mulf %295, %299 : vector<8x32xf32>
    %c0_114 = arith.constant 0 : index
    %c0_115 = arith.constant 0 : index
    %301 = vector.load %arg9[%c0_114, %c0_115] : memref<8x64xf32, #tpu.memory_space<vmem>>, vector<8x32xf32>
    tpu.vector_store %arg9[%c0_114, %c0_115], %300 {strides = array<i32>} : memref<8x64xf32, #tpu.memory_space<vmem>>, vector<8x32xf32>,
    %c0_116 = arith.constant 0 : index
    %c0_117 = arith.constant 0 : index
    %302 = vector.load %arg9[%c0_116, %c0_117] : memref<8x64xf32, #tpu.memory_space<vmem>>, vector<8x64xf32>
    %cst_118 = arith.constant dense<0.000000e+00> : vector<8x128xf32>
    %303 = tpu.matmul %302, %5, %cst_118 {dimension_numbers = #tpu.dot_dimension_numbers<[1], [0], [0], [1], [0, 0, 1, 1], [], []>} : vector<8x64xf32>, vector<64x128xf32>, vector<8x128xf32> -> vector<8x128xf32>
    %304 = arith.addf %303, %9 : vector<8x128xf32>
    %305 = vector.extract_strided_slice %304 {offsets = [0, 0], sizes = [8, 96], strides = [1, 1]} : vector<8x128xf32> to vector<8x96xf32>
    %306 = arith.negf %305 : vector<8x96xf32>
    %307 = math.exp %306 : vector<8x96xf32>
    %cst_119 = arith.constant 1.000000e+00 : f32
    %308 = vector.broadcast %cst_119 : f32 to vector<8x96xf32>
    %309 = arith.addf %308, %307 : vector<8x96xf32>
    %310 = arith.divf %308, %309 : vector<8x96xf32>
    %311 = vector.extract_strided_slice %304 {offsets = [0, 96], sizes = [8, 32], strides = [1, 1]} : vector<8x128xf32> to vector<8x32xf32>
    %312 = math.tanh %311 : vector<8x32xf32>
    %313 = vector.extract_strided_slice %310 {offsets = [0, 0], sizes = [8, 32], strides = [1, 1]} : vector<8x96xf32> to vector<8x32xf32>
    %314 = vector.extract_strided_slice %310 {offsets = [0, 32], sizes = [8, 32], strides = [1, 1]} : vector<8x96xf32> to vector<8x32xf32>
    %315 = vector.extract_strided_slice %310 {offsets = [0, 64], sizes = [8, 32], strides = [1, 1]} : vector<8x96xf32> to vector<8x32xf32>
    %316 = arith.mulf %314, %266 : vector<8x32xf32>
    %317 = arith.mulf %313, %312 : vector<8x32xf32>
    %318 = arith.addf %316, %317 : vector<8x32xf32>
    %319 = math.tanh %318 : vector<8x32xf32>
    %320 = arith.mulf %315, %319 : vector<8x32xf32>
    %c0_120 = arith.constant 0 : index
    %c32_121 = arith.constant 32 : index
    %321 = vector.load %arg9[%c0_120, %c32_121] : memref<8x64xf32, #tpu.memory_space<vmem>>, vector<8x32xf32>
    tpu.vector_store %arg9[%c0_120, %c32_121], %320 {strides = array<i32>} : memref<8x64xf32, #tpu.memory_space<vmem>>, vector<8x32xf32>,
    %c0_122 = arith.constant 0 : index
    %322 = arith.index_cast %279 : i32 to index
    %c0_123 = arith.constant 0 : index
    %323 = vector.load %arg2[%c0_122, %322, %c0_123] : memref<1x64x32xf32, #tpu.memory_space<vmem>>, vector<1x8x32xf32>
    %324 = vector.shape_cast %323 : vector<1x8x32xf32> to vector<8x32xf32>
    %325 = arith.addf %320, %324 : vector<8x32xf32>
    %c0_124 = arith.constant 0 : index
    %326 = arith.index_cast %279 : i32 to index
    %c0_125 = arith.constant 0 : index
    %327 = vector.load %arg8[%c0_124, %326, %c0_125] : memref<1x64x32xf32, #tpu.memory_space<vmem>>, vector<1x8x32xf32>
    %328 = vector.shape_cast %327 : vector<1x8x32xf32> to vector<8x32xf32>
    %329 = vector.shape_cast %325 : vector<8x32xf32> to vector<1x8x32xf32>
    tpu.vector_store %arg8[%c0_124, %326, %c0_125], %329 {strides = array<i32>} : memref<1x64x32xf32, #tpu.memory_space<vmem>>, vector<1x8x32xf32>,
    %c6_i32 = arith.constant 6 : i32
    %c8_i32_126 = arith.constant 8 : i32
    %330 = arith.muli %c6_i32, %c8_i32_126 : i32
    %331 = tpu.assume_multiple %330, 8 : i32
    %332 = arith.index_cast %331 : i32 to index
    %c0_127 = arith.constant 0 : index
    %333 = vector.load %arg12[%332, %c0_127] : memref<64x128xf32, #tpu.memory_space<vmem>>, vector<8x128xf32>
    %c0_128 = arith.constant 0 : index
    %c0_129 = arith.constant 0 : index
    %334 = vector.load %arg9[%c0_128, %c0_129] : memref<8x64xf32, #tpu.memory_space<vmem>>, vector<8x32xf32>
    %cst_130 = arith.constant dense<0.000000e+00> : vector<8x128xf32>
    %335 = tpu.matmul %334, %4, %cst_130 {dimension_numbers = #tpu.dot_dimension_numbers<[1], [0], [0], [1], [0, 0, 1, 1], [], []>} : vector<8x32xf32>, vector<32x128xf32>, vector<8x128xf32> -> vector<8x128xf32>
    %336 = arith.addf %333, %335 : vector<8x128xf32>
    %337 = vector.extract_strided_slice %336 {offsets = [0, 0], sizes = [8, 96], strides = [1, 1]} : vector<8x128xf32> to vector<8x96xf32>
    %338 = arith.negf %337 : vector<8x96xf32>
    %339 = math.exp %338 : vector<8x96xf32>
    %cst_131 = arith.constant 1.000000e+00 : f32
    %340 = vector.broadcast %cst_131 : f32 to vector<8x96xf32>
    %341 = arith.addf %340, %339 : vector<8x96xf32>
    %342 = arith.divf %340, %341 : vector<8x96xf32>
    %343 = vector.extract_strided_slice %336 {offsets = [0, 96], sizes = [8, 32], strides = [1, 1]} : vector<8x128xf32> to vector<8x32xf32>
    %344 = math.tanh %343 : vector<8x32xf32>
    %345 = vector.extract_strided_slice %342 {offsets = [0, 0], sizes = [8, 32], strides = [1, 1]} : vector<8x96xf32> to vector<8x32xf32>
    %346 = vector.extract_strided_slice %342 {offsets = [0, 32], sizes = [8, 32], strides = [1, 1]} : vector<8x96xf32> to vector<8x32xf32>
    %347 = vector.extract_strided_slice %342 {offsets = [0, 64], sizes = [8, 32], strides = [1, 1]} : vector<8x96xf32> to vector<8x32xf32>
    %348 = arith.mulf %346, %298 : vector<8x32xf32>
    %349 = arith.mulf %345, %344 : vector<8x32xf32>
    %350 = arith.addf %348, %349 : vector<8x32xf32>
    %351 = math.tanh %350 : vector<8x32xf32>
    %352 = arith.mulf %347, %351 : vector<8x32xf32>
    %c0_132 = arith.constant 0 : index
    %c0_133 = arith.constant 0 : index
    %353 = vector.load %arg9[%c0_132, %c0_133] : memref<8x64xf32, #tpu.memory_space<vmem>>, vector<8x32xf32>
    tpu.vector_store %arg9[%c0_132, %c0_133], %352 {strides = array<i32>} : memref<8x64xf32, #tpu.memory_space<vmem>>, vector<8x32xf32>,
    %c0_134 = arith.constant 0 : index
    %c0_135 = arith.constant 0 : index
    %354 = vector.load %arg9[%c0_134, %c0_135] : memref<8x64xf32, #tpu.memory_space<vmem>>, vector<8x64xf32>
    %cst_136 = arith.constant dense<0.000000e+00> : vector<8x128xf32>
    %355 = tpu.matmul %354, %5, %cst_136 {dimension_numbers = #tpu.dot_dimension_numbers<[1], [0], [0], [1], [0, 0, 1, 1], [], []>} : vector<8x64xf32>, vector<64x128xf32>, vector<8x128xf32> -> vector<8x128xf32>
    %356 = arith.addf %355, %9 : vector<8x128xf32>
    %357 = vector.extract_strided_slice %356 {offsets = [0, 0], sizes = [8, 96], strides = [1, 1]} : vector<8x128xf32> to vector<8x96xf32>
    %358 = arith.negf %357 : vector<8x96xf32>
    %359 = math.exp %358 : vector<8x96xf32>
    %cst_137 = arith.constant 1.000000e+00 : f32
    %360 = vector.broadcast %cst_137 : f32 to vector<8x96xf32>
    %361 = arith.addf %360, %359 : vector<8x96xf32>
    %362 = arith.divf %360, %361 : vector<8x96xf32>
    %363 = vector.extract_strided_slice %356 {offsets = [0, 96], sizes = [8, 32], strides = [1, 1]} : vector<8x128xf32> to vector<8x32xf32>
    %364 = math.tanh %363 : vector<8x32xf32>
    %365 = vector.extract_strided_slice %362 {offsets = [0, 0], sizes = [8, 32], strides = [1, 1]} : vector<8x96xf32> to vector<8x32xf32>
    %366 = vector.extract_strided_slice %362 {offsets = [0, 32], sizes = [8, 32], strides = [1, 1]} : vector<8x96xf32> to vector<8x32xf32>
    %367 = vector.extract_strided_slice %362 {offsets = [0, 64], sizes = [8, 32], strides = [1, 1]} : vector<8x96xf32> to vector<8x32xf32>
    %368 = arith.mulf %366, %318 : vector<8x32xf32>
    %369 = arith.mulf %365, %364 : vector<8x32xf32>
    %370 = arith.addf %368, %369 : vector<8x32xf32>
    %371 = math.tanh %370 : vector<8x32xf32>
    %372 = arith.mulf %367, %371 : vector<8x32xf32>
    %c0_138 = arith.constant 0 : index
    %c32_139 = arith.constant 32 : index
    %373 = vector.load %arg9[%c0_138, %c32_139] : memref<8x64xf32, #tpu.memory_space<vmem>>, vector<8x32xf32>
    tpu.vector_store %arg9[%c0_138, %c32_139], %372 {strides = array<i32>} : memref<8x64xf32, #tpu.memory_space<vmem>>, vector<8x32xf32>,
    %c0_140 = arith.constant 0 : index
    %374 = arith.index_cast %331 : i32 to index
    %c0_141 = arith.constant 0 : index
    %375 = vector.load %arg2[%c0_140, %374, %c0_141] : memref<1x64x32xf32, #tpu.memory_space<vmem>>, vector<1x8x32xf32>
    %376 = vector.shape_cast %375 : vector<1x8x32xf32> to vector<8x32xf32>
    %377 = arith.addf %372, %376 : vector<8x32xf32>
    %c0_142 = arith.constant 0 : index
    %378 = arith.index_cast %331 : i32 to index
    %c0_143 = arith.constant 0 : index
    %379 = vector.load %arg8[%c0_142, %378, %c0_143] : memref<1x64x32xf32, #tpu.memory_space<vmem>>, vector<1x8x32xf32>
    %380 = vector.shape_cast %379 : vector<1x8x32xf32> to vector<8x32xf32>
    %381 = vector.shape_cast %377 : vector<8x32xf32> to vector<1x8x32xf32>
    tpu.vector_store %arg8[%c0_142, %378, %c0_143], %381 {strides = array<i32>} : memref<1x64x32xf32, #tpu.memory_space<vmem>>, vector<1x8x32xf32>,
    %c7_i32 = arith.constant 7 : i32
    %c8_i32_144 = arith.constant 8 : i32
    %382 = arith.muli %c7_i32, %c8_i32_144 : i32
    %383 = tpu.assume_multiple %382, 8 : i32
    %384 = arith.index_cast %383 : i32 to index
    %c0_145 = arith.constant 0 : index
    %385 = vector.load %arg12[%384, %c0_145] : memref<64x128xf32, #tpu.memory_space<vmem>>, vector<8x128xf32>
    %c0_146 = arith.constant 0 : index
    %c0_147 = arith.constant 0 : index
    %386 = vector.load %arg9[%c0_146, %c0_147] : memref<8x64xf32, #tpu.memory_space<vmem>>, vector<8x32xf32>
    %cst_148 = arith.constant dense<0.000000e+00> : vector<8x128xf32>
    %387 = tpu.matmul %386, %4, %cst_148 {dimension_numbers = #tpu.dot_dimension_numbers<[1], [0], [0], [1], [0, 0, 1, 1], [], []>} : vector<8x32xf32>, vector<32x128xf32>, vector<8x128xf32> -> vector<8x128xf32>
    %388 = arith.addf %385, %387 : vector<8x128xf32>
    %389 = vector.extract_strided_slice %388 {offsets = [0, 0], sizes = [8, 96], strides = [1, 1]} : vector<8x128xf32> to vector<8x96xf32>
    %390 = arith.negf %389 : vector<8x96xf32>
    %391 = math.exp %390 : vector<8x96xf32>
    %cst_149 = arith.constant 1.000000e+00 : f32
    %392 = vector.broadcast %cst_149 : f32 to vector<8x96xf32>
    %393 = arith.addf %392, %391 : vector<8x96xf32>
    %394 = arith.divf %392, %393 : vector<8x96xf32>
    %395 = vector.extract_strided_slice %388 {offsets = [0, 96], sizes = [8, 32], strides = [1, 1]} : vector<8x128xf32> to vector<8x32xf32>
    %396 = math.tanh %395 : vector<8x32xf32>
    %397 = vector.extract_strided_slice %394 {offsets = [0, 0], sizes = [8, 32], strides = [1, 1]} : vector<8x96xf32> to vector<8x32xf32>
    %398 = vector.extract_strided_slice %394 {offsets = [0, 32], sizes = [8, 32], strides = [1, 1]} : vector<8x96xf32> to vector<8x32xf32>
    %399 = vector.extract_strided_slice %394 {offsets = [0, 64], sizes = [8, 32], strides = [1, 1]} : vector<8x96xf32> to vector<8x32xf32>
    %400 = arith.mulf %398, %350 : vector<8x32xf32>
    %401 = arith.mulf %397, %396 : vector<8x32xf32>
    %402 = arith.addf %400, %401 : vector<8x32xf32>
    %403 = math.tanh %402 : vector<8x32xf32>
    %404 = arith.mulf %399, %403 : vector<8x32xf32>
    %c0_150 = arith.constant 0 : index
    %c0_151 = arith.constant 0 : index
    %405 = vector.load %arg9[%c0_150, %c0_151] : memref<8x64xf32, #tpu.memory_space<vmem>>, vector<8x32xf32>
    tpu.vector_store %arg9[%c0_150, %c0_151], %404 {strides = array<i32>} : memref<8x64xf32, #tpu.memory_space<vmem>>, vector<8x32xf32>,
    %c0_152 = arith.constant 0 : index
    %c0_153 = arith.constant 0 : index
    %406 = vector.load %arg9[%c0_152, %c0_153] : memref<8x64xf32, #tpu.memory_space<vmem>>, vector<8x64xf32>
    %cst_154 = arith.constant dense<0.000000e+00> : vector<8x128xf32>
    %407 = tpu.matmul %406, %5, %cst_154 {dimension_numbers = #tpu.dot_dimension_numbers<[1], [0], [0], [1], [0, 0, 1, 1], [], []>} : vector<8x64xf32>, vector<64x128xf32>, vector<8x128xf32> -> vector<8x128xf32>
    %408 = arith.addf %407, %9 : vector<8x128xf32>
    %409 = vector.extract_strided_slice %408 {offsets = [0, 0], sizes = [8, 96], strides = [1, 1]} : vector<8x128xf32> to vector<8x96xf32>
    %410 = arith.negf %409 : vector<8x96xf32>
    %411 = math.exp %410 : vector<8x96xf32>
    %cst_155 = arith.constant 1.000000e+00 : f32
    %412 = vector.broadcast %cst_155 : f32 to vector<8x96xf32>
    %413 = arith.addf %412, %411 : vector<8x96xf32>
    %414 = arith.divf %412, %413 : vector<8x96xf32>
    %415 = vector.extract_strided_slice %408 {offsets = [0, 96], sizes = [8, 32], strides = [1, 1]} : vector<8x128xf32> to vector<8x32xf32>
    %416 = math.tanh %415 : vector<8x32xf32>
    %417 = vector.extract_strided_slice %414 {offsets = [0, 0], sizes = [8, 32], strides = [1, 1]} : vector<8x96xf32> to vector<8x32xf32>
    %418 = vector.extract_strided_slice %414 {offsets = [0, 32], sizes = [8, 32], strides = [1, 1]} : vector<8x96xf32> to vector<8x32xf32>
    %419 = vector.extract_strided_slice %414 {offsets = [0, 64], sizes = [8, 32], strides = [1, 1]} : vector<8x96xf32> to vector<8x32xf32>
    %420 = arith.mulf %418, %370 : vector<8x32xf32>
    %421 = arith.mulf %417, %416 : vector<8x32xf32>
    %422 = arith.addf %420, %421 : vector<8x32xf32>
    %423 = math.tanh %422 : vector<8x32xf32>
    %424 = arith.mulf %419, %423 : vector<8x32xf32>
    %c0_156 = arith.constant 0 : index
    %c32_157 = arith.constant 32 : index
    %425 = vector.load %arg9[%c0_156, %c32_157] : memref<8x64xf32, #tpu.memory_space<vmem>>, vector<8x32xf32>
    tpu.vector_store %arg9[%c0_156, %c32_157], %424 {strides = array<i32>} : memref<8x64xf32, #tpu.memory_space<vmem>>, vector<8x32xf32>,
    %c0_158 = arith.constant 0 : index
    %426 = arith.index_cast %383 : i32 to index
    %c0_159 = arith.constant 0 : index
    %427 = vector.load %arg2[%c0_158, %426, %c0_159] : memref<1x64x32xf32, #tpu.memory_space<vmem>>, vector<1x8x32xf32>
    %428 = vector.shape_cast %427 : vector<1x8x32xf32> to vector<8x32xf32>
    %429 = arith.addf %424, %428 : vector<8x32xf32>
    %c0_160 = arith.constant 0 : index
    %430 = arith.index_cast %383 : i32 to index
    %c0_161 = arith.constant 0 : index
    %431 = vector.load %arg8[%c0_160, %430, %c0_161] : memref<1x64x32xf32, #tpu.memory_space<vmem>>, vector<1x8x32xf32>
    %432 = vector.shape_cast %431 : vector<1x8x32xf32> to vector<8x32xf32>
    %433 = vector.shape_cast %429 : vector<8x32xf32> to vector<1x8x32xf32>
    tpu.vector_store %arg8[%c0_160, %430, %c0_161], %433 {strides = array<i32>} : memref<1x64x32xf32, #tpu.memory_space<vmem>>, vector<1x8x32xf32>,
    %c8_i32_162 = arith.constant 8 : i32
    %c0_163 = arith.constant 0 : index
    %c0_164 = arith.constant 0 : index
    %434 = vector.load %arg10[%c0_163, %c0_164] : memref<8x32xf32, #tpu.memory_space<vmem>>, vector<8x32xf32>
    tpu.vector_store %arg10[%c0_163, %c0_164], %402 {strides = array<i32>} : memref<8x32xf32, #tpu.memory_space<vmem>>, vector<8x32xf32>,
    %c0_165 = arith.constant 0 : index
    %c0_166 = arith.constant 0 : index
    %435 = vector.load %arg11[%c0_165, %c0_166] : memref<8x32xf32, #tpu.memory_space<vmem>>, vector<8x32xf32>
    tpu.vector_store %arg11[%c0_165, %c0_166], %422 {strides = array<i32>} : memref<8x32xf32, #tpu.memory_space<vmem>>, vector<8x32xf32>,
    return
  }
  func.func @transform_0(%arg0: i32, %arg1: i32) -> (i32, i32, i32) {
    %c0_i32 = arith.constant 0 : i32
    %c0_i32_0 = arith.constant 0 : i32
    return %arg0, %arg1, %c0_i32 : i32, i32, i32
  }
  func.func @transform_1(%arg0: i32, %arg1: i32) -> (i32, i32) {
    %c0_i32 = arith.constant 0 : i32
    %c0_i32_0 = arith.constant 0 : i32
    %c0_i32_1 = arith.constant 0 : i32
    return %c0_i32, %c0_i32_0 : i32, i32
  }
  func.func @transform_2(%arg0: i32, %arg1: i32) -> (i32, i32) {
    %c0_i32 = arith.constant 0 : i32
    %c0_i32_0 = arith.constant 0 : i32
    %c0_i32_1 = arith.constant 0 : i32
    return %c0_i32, %c0_i32_0 : i32, i32
  }
  func.func @transform_3(%arg0: i32, %arg1: i32) -> (i32, i32) {
    %c0_i32 = arith.constant 0 : i32
    %c0_i32_0 = arith.constant 0 : i32
    %c0_i32_1 = arith.constant 0 : i32
    return %c0_i32, %c0_i32_0 : i32, i32
  }
  func.func @transform_4(%arg0: i32, %arg1: i32) -> (i32, i32) {
    %c0_i32 = arith.constant 0 : i32
    %c0_i32_0 = arith.constant 0 : i32
    %c0_i32_1 = arith.constant 0 : i32
    return %c0_i32, %c0_i32_0 : i32, i32
  }
  func.func @transform_5(%arg0: i32, %arg1: i32) -> (i32, i32) {
    %c0_i32 = arith.constant 0 : i32
    %c0_i32_0 = arith.constant 0 : i32
    %c0_i32_1 = arith.constant 0 : i32
    return %c0_i32, %c0_i32_0 : i32, i32
  }
  func.func @transform_6(%arg0: i32, %arg1: i32) -> (i32, i32, i32) {
    %c0_i32 = arith.constant 0 : i32
    %c0_i32_0 = arith.constant 0 : i32
    return %arg0, %arg1, %c0_i32 : i32, i32, i32
  }
}

</mosaic_0001>

<bundles_post_ra>
// kernel: slstm_forward.1
= control target key start
LH: loop header
LB: loop body
LE: loop exit
PB: predicated region body
PF: predicated region fallthrough
CT: control target
= control target key end

     0   :  { %vm27_vm0 = vcmask 523264   ;;  %vm29_vm1 = vcmask 261120   ;;  %v1543_v2 = vmov 0.0   ;;  %s1544_s18 = smov 32   ;;  %s1545_s27 = smov 64   ;;  %vm282_vm10 = vcmask 523520   ;;  %s2099_s1 = inlined_call_operand.vmem [shape: f32[32,128], index: 1, kind: input, shape index: {}]   ;;  %s2100_s2 = inlined_call_operand.vmem [shape: f32[32,128], index: 2, kind: input, shape index: {}]   ;;  %s2101_s0 = inlined_call_operand.vmem [shape: f32[1,64,32], index: 0, kind: input, shape index: {}]   ;;  %s2102_s4 = inlined_call_operand.vmem [shape: f32[1,128], index: 4, kind: input, shape index: {}]   ;;  %s2103_s3 = inlined_call_operand.vmem [shape: f32[64,128], index: 3, kind: input, shape index: {}]   ;;  %s2104_s5 = inlined_call_operand.vmem [shape: f32[1,128], index: 5, kind: input, shape index: {}]   ;;  %s2105_s6 = inlined_call_operand.vmem [shape: f32[1,64,32], index: 6, kind: output, shape index: {}]  }
   0x1   :  { %v35_v0 = vld [vmem:[%s2099_s1 + $0x18] sm:$0xff]  ;;  %v34_v1 = vld [vmem:[%s2099_s1 + $0x10] sm:$0xff]  ;;  %28 = vst.msk [vmem:[#allocation2] sm:$0xff] %vm27_vm0, %v1543_v2  ;;  %v33_v4 = vld [vmem:[%s2099_s1 + $0x8] sm:$0xff]  ;;  %s1546_s13 = smov 96  }
   0x2   :  { %1399 = vmatpush.msra.mxu1 %v35_v0  ;;  %101 = vmatpush.msra.mxu0 %v35_v0  ;;  %v1592_v3 = vld [vmem:[%s2100_s2 + $0x18] sm:$0xff]  ;;  %30 = vst.msk [vmem:[#allocation3] sm:$0xff] %vm29_vm1, %v1543_v2  ;;  %v1603_v5 = vld [vmem:[%s2100_s2 + $0x10] sm:$0xff]  ;;  %v32_v6 = vld [vmem:[%s2099_s1] sm:$0xff] }
   0x3   :  { %31 = vst.msk [vmem:[#allocation4] sm:$0xff] %vm29_vm1, %v1543_v2  ;;  %313 = vmatpush.msra.mxu3 %v1592_v3  ;;  %v60_v7 = vld [vmem:[%s2101_s0 + $0x38] sm:$0xff]  ;;  %v1615_v8 = vld [vmem:[%s2100_s2 + $0x8] sm:$0xff]  ;;  %v53_v9 = vld [vmem:[%s2101_s0] sm:$0xff] }
   0x4   :  { %1400 = vmatpush.msra.mxu1 %v34_v1  ;;  %102 = vmatpush.msra.mxu0 %v34_v1  ;;  %v1626_v10 = vld [vmem:[%s2100_s2] sm:$0xff]  ;;  %v1656_v40 = vld [vmem:[%s2103_s3 + $0x38] sm:$0xff]  ;;  %v1661_v41 = vld [vmem:[%s2103_s3 + $0x30] sm:$0xff] }
   0x5   :  { %314 = vmatpush.msra.mxu3 %v1603_v5  ;;  %v1643_v14 = vld [vmem:[%s2102_s4] ss:$0 sm:$0xff]  ;;  %225 = vmatpush.msra.mxu2 %v1656_v40  ;;  %v1668_v42 = vld [vmem:[%s2103_s3 + $0x28] sm:$0xff]  ;;  %v1689_v46 = vld [vmem:[%s2103_s3 + $0x18] sm:$0xff] }
   0x6   :  { %1401 = vmatpush.msra.mxu1 %v33_v4  ;;  %103 = vmatpush.msra.mxu0 %v33_v4  ;;  %v1676_v43 = vld [vmem:[%s2103_s3 + $0x20] sm:$0xff]  ;;  %v1694_v47 = vld [vmem:[%s2103_s3 + $0x10] sm:$0xff]  ;;  %v1701_v48 = vld [vmem:[%s2103_s3 + $0x8] sm:$0xff] }
   0x7   :  { %315 = vmatpush.msra.mxu3 %v1615_v8  ;;  %226 = vmatpush.msra.mxu2 %v1661_v41  ;;  %v1709_v49 = vld [vmem:[%s2103_s3] sm:$0xff] }
   0x8   :  { %1402 = vmatpush.msra.mxu1 %v32_v6  ;;  %104 = vmatpush.msra.mxu0 %v32_v6  ;;  %v141_v11 = vld [vmem:[#allocation2] sm:$0xff] }
   0x9   :  { %1352 = vmatmul.msk.f32.vlgmr.msra.gmra.mxu1 %vm29_vm1, %v60_v7  ;;  %1345 = vmatmul.msk.f32.vlgmr.msra.gmra.mxu0 %vm29_vm1, %v53_v9  ;;  %v138_v19 = vld [vmem:[#allocation3] sm:$0xff]  ;;  %v1748_v53 = vld [vmem:[%s2104_s5] ss:$0 sm:$0xff] }
   0xa   :  { %157 = vmatpush.msrb.mxu1 %v1592_v3  ;;  %316 = vmatpush.msra.mxu3 %v1626_v10  ;;  %v139_v50 = vld [vmem:[#allocation4] sm:$0xff] }
   0xb   :  { %1264 = vmatpush.msrb.mxu0 %v1656_v40  ;;  %227 = vmatpush.msra.mxu2 %v1668_v42 }
   0xc   :  { %461 = vmatpush.msrb.mxu3 %v1592_v3  ;;  %158 = vmatpush.msrb.mxu1 %v1603_v5 }
   0xd   :  { %1265 = vmatpush.msrb.mxu0 %v1661_v41  ;;  %228 = vmatpush.msra.mxu2 %v1676_v43 }
   0xe   :  { %462 = vmatpush.msrb.mxu3 %v1603_v5  ;;  %159 = vmatpush.msrb.mxu1 %v1615_v8 }
   0xf   :  { %1266 = vmatpush.msrb.mxu0 %v1668_v42  ;;  %229 = vmatpush.msra.mxu2 %v1689_v46 }
  0x10   :  { %463 = vmatpush.msrb.mxu3 %v1615_v8  ;;  %160 = vmatpush.msrb.mxu1 %v1626_v10 }
  0x11   :  { %1353 = vmatmul.msk.f32.vlgmr.msrb.gmra.mxu1 %vm29_vm1, %v141_v11  ;;  %1267 = vmatpush.msrb.mxu0 %v1676_v43 }
  0x12   :  { %464 = vmatpush.msrb.mxu3 %v1626_v10  ;;  %376 = vmatpush.msra.mxu1 %v1656_v40 }
  0x13   :  { %1268 = vmatpush.msrb.mxu0 %v1689_v46  ;;  %230 = vmatpush.msra.mxu2 %v1694_v47 }
  0x14   :  { %377 = vmatpush.msra.mxu1 %v1661_v41 }
  0x15   :  { %1269 = vmatpush.msrb.mxu0 %v1694_v47  ;;  %231 = vmatpush.msra.mxu2 %v1701_v48 }
  0x16   :  { %378 = vmatpush.msra.mxu1 %v1668_v42 }
  0x17   :  { %1270 = vmatpush.msrb.mxu0 %v1701_v48  ;;  %232 = vmatpush.msra.mxu2 %v1709_v49 }
  0x18   :  { %379 = vmatpush.msra.mxu1 %v1676_v43 }
  0x19   :  { %524 = vmatpush.msrb.mxu2 %v1656_v40  ;;  %1271 = vmatpush.msrb.mxu0 %v1709_v49 }
  0x1a   :  { %380 = vmatpush.msra.mxu1 %v1689_v46 }
  0x1b   :  { %525 = vmatpush.msrb.mxu2 %v1661_v41 }
  0x1c   :  { %381 = vmatpush.msra.mxu1 %v1694_v47 }
  0x1d   :  { %526 = vmatpush.msrb.mxu2 %v1668_v42 }
  0x1e   :  { %382 = vmatpush.msra.mxu1 %v1701_v48 }
  0x1f   :  { %527 = vmatpush.msrb.mxu2 %v1676_v43 }
  0x20   :  { %383 = vmatpush.msra.mxu1 %v1709_v49 }
  0x21   :  { %528 = vmatpush.msrb.mxu2 %v1689_v46 }
  0x22   :  { %672 = vmatpush.msrb.mxu1 %v1656_v40 }
  0x23   :  { %529 = vmatpush.msrb.mxu2 %v1694_v47 }
  0x24   :  { %673 = vmatpush.msrb.mxu1 %v1661_v41 }
  0x25   :  { %530 = vmatpush.msrb.mxu2 %v1701_v48 }
  0x26   :  { %674 = vmatpush.msrb.mxu1 %v1668_v42 }
  0x27   :  { %531 = vmatpush.msrb.mxu2 %v1709_v49 }
  0x28   :  { %675 = vmatpush.msrb.mxu1 %v1676_v43 }
  0x2a   :  { %676 = vmatpush.msrb.mxu1 %v1689_v46 }
  0x2c   :  { %677 = vmatpush.msrb.mxu1 %v1694_v47 }
  0x2e   :  { %678 = vmatpush.msrb.mxu1 %v1701_v48 }
  0x30   :  { %679 = vmatpush.msrb.mxu1 %v1709_v49 }
  0x86   :  { %v1638_v12 = vpop.f32.mrf.mxu1  ;;  %v106_v13 = vpop.f32.mrf.mxu0 }
  0x87   :  { %v107_v15 = vadd.f32 %v1643_v14, %v106_v13 }
  0x8e   :  { %v162_v16 = vpop.f32.mrf.mxu1 }
  0x8f   :  { %v165_v17 = vadd.f32 %v162_v16, %v107_v15 }
  0x91   :  { %1409 = vtanh.f32 %v165_v17  ;;  %v1354_v20 = vmul.f32 -1.442695, %v165_v17 }
  0x93   :  { %1411 = vpow2.f32 %v1354_v20 }
  0x97   :  { %v1410_v18 = vpop.eup %1409 }
  0x98   :  { %192 = vrot.lane.b32.xlu0 %v1410_v18, %s1544_s18 }
  0x99   :  { %v1412_v21 = vpop.eup %1411 }
  0x9a   :  { %v169_v22 = vadd.f32 1.0, %v1412_v21  ;;  %v54_v21 = vld [vmem:[%s2101_s0 + $0x8] sm:$0xff] }
  0x9b   :  { %1346 = vmatmul.msk.f32.gmra.mxu0 %vm29_vm1, %v54_v21 }
  0x9c   :  { %1413 = vrcp.f32 %v169_v22  ;;  %v181_v28 = vand.u32 2147483648, %v169_v22  ;;  %vm175_vm3 = vweird.f32 %v169_v22  ;;  %v179_v29 = vand.u32 2147483647, %v169_v22 }
  0x9e   :  { %v182_v31 = vor.u32 1.1754944e-38, %v181_v28  ;;  %vm180_vm5 = vcmp.eq.f32.partialorder %v179_v29, 8.507059e+37 }
  0xa0   :  { %187 = vrot.lane.b32.xlu0 %v138_v19, %s1544_s18 }
  0xa2   :  { %v1414_v23 = vpop.eup %1413 }
  0xa3   :  { %v171_v24 = vmul.f32 %v1414_v23, %v169_v22  ;;  %vm176_vm2 = vweird.f32 %v1414_v23 }
  0xa4   :  { %vm177_vm4 = vmor %vm175_vm3, %vm176_vm2 }
  0xa5   :  { %v172_v25 = vsub.f32 1.0, %v171_v24 }
  0xa7   :  { %v173_v26 = vmul.f32 %v1414_v23, %v172_v25 }
  0xa8   :  { %258 = vrot.lane.b32.xlu0 %v139_v50, %s1544_s18 }
  0xa9   :  { %v174_v27 = vadd.f32 %v1414_v23, %v173_v26 }
  0xab   :  { %v178_v30 = vsel %vm177_vm4, %v1414_v23, %v174_v27 }
  0xac   :  { %v183_v33 = vsel %vm180_vm5, %v182_v31, %v178_v30 }
 0x10a   :  { %v193_v32 = vpop.permute.xlu0 %192 }
 0x10b   :  { %v195_v34 = vmul.f32 %v193_v32, %v183_v33 }
 0x10d   :  { %197 = vrot.lane.b32.xlu1 %v195_v34, %s1544_s18 }
 0x112   :  { %v188_v35 = vpop.permute.xlu0 %187 }
 0x113   :  { %v190_v36 = vmul.f32 %v188_v35, %v183_v33 }
 0x118   :  { %v109_v24 = vpop.f32.mrf.mxu0 }
 0x119   :  { %v110_v25 = vadd.f32 %v1643_v14, %v109_v24 }
 0x11a   :  { %v259_v13 = vpop.permute.xlu0 %258 }
 0x17f   :  { %v198_v37 = vpop.permute.xlu1 %197 }
 0x180   :  { %v1649_v38 = vadd.f32 %v198_v37, %v190_v36 }
 0x182   :  { %1415 = vtanh.f32 %v1649_v38 }
 0x188   :  { %v1416_v39 = vpop.eup %1415 }
 0x189   :  { %203 = vrot.lane.b32.xlu1 %v1416_v39, %s1544_s18 }
 0x1fb   :  { %v204_v44 = vpop.permute.xlu1 %203 }
 0x1fc   :  { %v206_v45 = vmul.f32 %v204_v44, %v183_v33 }
 0x1fe   :  { %208 = vrot.lane.b32.xlu2 %v206_v45, %s1545_s27 }
 0x258   :  { %v209_v51 = vpop.permute.xlu2 %208 }
 0x259   :  { %211 = vst.msk [vmem:[#allocation2] sm:$0xff] %vm29_vm1, %v209_v51 }
 0x260   :  { %v212_v52 = vld [vmem:[#allocation2] sm:$0xff] }
 0x261   :  { %1355 = vmatmul.msk.f32.vlgmr.msra.gmra.mxu2 %vm27_vm0, %v212_v52 }
 0x262   :  { %820 = vmatpush.msra.mxu2 %v1656_v40 }
 0x264   :  { %821 = vmatpush.msra.mxu2 %v1661_v41 }
 0x266   :  { %822 = vmatpush.msra.mxu2 %v1668_v42 }
 0x268   :  { %823 = vmatpush.msra.mxu2 %v1676_v43 }
 0x26a   :  { %824 = vmatpush.msra.mxu2 %v1689_v46 }
 0x26c   :  { %825 = vmatpush.msra.mxu2 %v1694_v47 }
 0x26e   :  { %826 = vmatpush.msra.mxu2 %v1701_v48 }
 0x270   :  { %827 = vmatpush.msra.mxu2 %v1709_v49 }
 0x2e4   :  { %v234_v54 = vpop.f32.mrf.mxu2 }
 0x2e5   :  { %v235_v55 = vadd.f32 %v1748_v53, %v234_v54 }
 0x2e7   :  { %1417 = vtanh.f32 %v235_v55  ;;  %v1356_v57 = vmul.f32 -1.442695, %v235_v55 }
 0x2e9   :  { %1419 = vpow2.f32 %v1356_v57 }
 0x2ed   :  { %v1418_v56 = vpop.eup %1417 }
 0x2ee   :  { %263 = vrot.lane.b32.xlu2 %v1418_v56, %s1544_s18 }
 0x2ef   :  { %v1420_v58 = vpop.eup %1419 }
 0x2f0   :  { %v240_v59 = vadd.f32 1.0, %v1420_v58 }
 0x2f2   :  { %1421 = vrcp.f32 %v240_v59  ;;  %v252_v1 = vand.u32 2147483648, %v240_v59  ;;  %vm246_vm7 = vweird.f32 %v240_v59  ;;  %v250_v2 = vand.u32 2147483647, %v240_v59 }
 0x2f4   :  { %v253_v6 = vor.u32 1.1754944e-38, %v252_v1  ;;  %vm251_vm9 = vcmp.eq.f32.partialorder %v250_v2, 8.507059e+37 }
 0x2f8   :  { %v1422_v60 = vpop.eup %1421 }
 0x2f9   :  { %v242_v61 = vmul.f32 %v1422_v60, %v240_v59  ;;  %vm247_vm6 = vweird.f32 %v1422_v60 }
 0x2fa   :  { %vm248_vm8 = vmor %vm246_vm7, %vm247_vm6 }
 0x2fb   :  { %v243_v62 = vsub.f32 1.0, %v242_v61 }
 0x2fd   :  { %v244_v63 = vmul.f32 %v1422_v60, %v243_v62 }
 0x2ff   :  { %v245_v0 = vadd.f32 %v1422_v60, %v244_v63 }
 0x301   :  { %v249_v4 = vsel %vm248_vm8, %v1422_v60, %v245_v0 }
 0x302   :  { %v254_v7 = vsel %vm251_vm9, %v253_v6, %v249_v4 }
 0x303   :  { %v261_v15 = vmul.f32 %v259_v13, %v254_v7 }
 0x348   :  { %v264_v9 = vpop.permute.xlu2 %263 }
 0x349   :  { %v266_v11 = vmul.f32 %v264_v9, %v254_v7 }
 0x34b   :  { %268 = vrot.lane.b32.xlu1 %v266_v11, %s1544_s18 }
 0x3bd   :  { %v269_v16 = vpop.permute.xlu1 %268 }
 0x3be   :  { %v1753_v17 = vadd.f32 %v269_v16, %v261_v15 }
 0x3c0   :  { %1423 = vtanh.f32 %v1753_v17 }
 0x3c6   :  { %v1424_v18 = vpop.eup %1423 }
 0x3c7   :  { %274 = vrot.lane.b32.xlu2 %v1424_v18, %s1544_s18 }
 0x421   :  { %v275_v19 = vpop.permute.xlu2 %274 }
 0x422   :  { %v1757_v20 = vmul.f32 %v275_v19, %v254_v7 }
 0x424   :  { %279 = vrot.lane.b32.xlu0 %v1757_v20, %s1546_s13 }
 0x496   :  { %v280_v22 = vpop.permute.xlu0 %279 }
 0x497   :  { %283 = vst.msk [vmem:[#allocation2] sm:$0xff] %vm282_vm10, %v280_v22 }
 0x49e   :  { %v297_v23 = vld [vmem:[#allocation2] sm:$0xff] }
 0x49f   :  { %1357 = vmatmul.msk.f32.vlgmr.msra.gmra.mxu3 %vm29_vm1, %v297_v23 }
 0x4a0   :  { %609 = vmatpush.msra.mxu3 %v1592_v3 }
 0x4a2   :  { %610 = vmatpush.msra.mxu3 %v1603_v5 }
 0x4a4   :  { %611 = vmatpush.msra.mxu3 %v1615_v8 }
 0x4a6   :  { %612 = vmatpush.msra.mxu3 %v1626_v10 }
 0x522   :  { %v318_v26 = vpop.f32.mrf.mxu3 }
 0x523   :  { %v321_v27 = vadd.f32 %v318_v26, %v110_v25 }
 0x525   :  { %1425 = vtanh.f32 %v321_v27  ;;  %v1358_v29 = vmul.f32 -1.442695, %v321_v27 }
 0x527   :  { %1427 = vpow2.f32 %v1358_v29  ;;  %v1805_v29 = vld [vmem:[%s2101_s0 + $0x10] sm:$0xff] }
 0x528   :  { %1347 = vmatmul.msk.f32.gmra.mxu0 %vm29_vm1, %v1805_v29 }
 0x52b   :  { %v1426_v28 = vpop.eup %1425 }
 0x52c   :  { %344 = vrot.lane.b32.xlu1 %v1426_v28, %s1544_s18 }
 0x52d   :  { %v1428_v30 = vpop.eup %1427 }
 0x52e   :  { %v325_v31 = vadd.f32 1.0, %v1428_v30 }
 0x530   :  { %1429 = vrcp.f32 %v325_v31  ;;  %v337_v37 = vand.u32 2147483648, %v325_v31  ;;  %vm331_vm12 = vweird.f32 %v325_v31  ;;  %v335_v39 = vand.u32 2147483647, %v325_v31 }
 0x532   :  { %v338_v45 = vor.u32 1.1754944e-38, %v337_v37  ;;  %vm336_vm14 = vcmp.eq.f32.partialorder %v335_v39, 8.507059e+37 }
 0x536   :  { %v1430_v32 = vpop.eup %1429 }
 0x537   :  { %v327_v33 = vmul.f32 %v1430_v32, %v325_v31  ;;  %vm332_vm11 = vweird.f32 %v1430_v32 }
 0x538   :  { %vm333_vm13 = vmor %vm331_vm12, %vm332_vm11 }
 0x539   :  { %v328_v34 = vsub.f32 1.0, %v327_v33 }
 0x53b   :  { %v329_v35 = vmul.f32 %v1430_v32, %v328_v34 }
 0x53d   :  { %v330_v36 = vadd.f32 %v1430_v32, %v329_v35 }
 0x53f   :  { %v334_v44 = vsel %vm333_vm13, %v1430_v32, %v330_v36 }
 0x540   :  { %v339_v51 = vsel %vm336_vm14, %v338_v45, %v334_v44 }
 0x541   :  { %v342_v54 = vmul.f32 %v339_v51, %v1649_v38 }
 0x59e   :  { %v345_v50 = vpop.permute.xlu1 %344 }
 0x59f   :  { %v347_v52 = vmul.f32 %v345_v50, %v339_v51 }
 0x5a1   :  { %349 = vrot.lane.b32.xlu2 %v347_v52, %s1544_s18 }
 0x5a5   :  { %v112_v31 = vpop.f32.mrf.mxu0 }
 0x5a6   :  { %v113_v32 = vadd.f32 %v1643_v14, %v112_v31 }
 0x5fb   :  { %v350_v55 = vpop.permute.xlu2 %349 }
 0x5fc   :  { %v1775_v56 = vadd.f32 %v350_v55, %v342_v54 }
 0x5fe   :  { %1431 = vtanh.f32 %v1775_v56 }
 0x604   :  { %v1432_v57 = vpop.eup %1431 }
 0x605   :  { %355 = vrot.lane.b32.xlu0 %v1432_v57, %s1544_s18 }
 0x677   :  { %v356_v58 = vpop.permute.xlu0 %355 }
 0x678   :  { %v358_v59 = vmul.f32 %v356_v58, %v339_v51 }
 0x67a   :  { %360 = vrot.lane.b32.xlu1 %v358_v59, %s1545_s27 }
 0x6ec   :  { %v361_v60 = vpop.permute.xlu1 %360 }
 0x6ed   :  { %363 = vst.msk [vmem:[#allocation2] sm:$0xff] %vm29_vm1, %v361_v60 }
 0x6f4   :  { %v364_v61 = vld [vmem:[#allocation2] sm:$0xff] }
 0x6f5   :  { %1359 = vmatmul.msk.f32.vlgmr.msra.gmra.mxu1 %vm27_vm0, %v364_v61 }
 0x6f6   :  { %968 = vmatpush.msra.mxu1 %v1656_v40 }
 0x6f8   :  { %969 = vmatpush.msra.mxu1 %v1661_v41 }
 0x6fa   :  { %970 = vmatpush.msra.mxu1 %v1668_v42 }
 0x6fc   :  { %971 = vmatpush.msra.mxu1 %v1676_v43 }
 0x6fe   :  { %972 = vmatpush.msra.mxu1 %v1689_v46 }
 0x700   :  { %973 = vmatpush.msra.mxu1 %v1694_v47 }
 0x702   :  { %974 = vmatpush.msra.mxu1 %v1701_v48 }
 0x704   :  { %975 = vmatpush.msra.mxu1 %v1709_v49 }
 0x772   :  { %v385_v38 = vpop.f32.mrf.mxu1 }
 0x773   :  { %v386_v62 = vadd.f32 %v1748_v53, %v385_v38 }
 0x775   :  { %1433 = vtanh.f32 %v386_v62  ;;  %v1360_v0 = vmul.f32 -1.442695, %v386_v62 }
 0x777   :  { %1435 = vpow2.f32 %v1360_v0 }
 0x77b   :  { %v1434_v63 = vpop.eup %1433 }
 0x77c   :  { %410 = vrot.lane.b32.xlu2 %v1434_v63, %s1544_s18 }
 0x77d   :  { %v1436_v1 = vpop.eup %1435 }
 0x77e   :  { %v391_v2 = vadd.f32 1.0, %v1436_v1 }
 0x780   :  { %1437 = vrcp.f32 %v391_v2  ;;  %v403_v13 = vand.u32 2147483648, %v391_v2  ;;  %vm397_vm2 = vweird.f32 %v391_v2  ;;  %v401_v15 = vand.u32 2147483647, %v391_v2 }
 0x782   :  { %v404_v18 = vor.u32 1.1754944e-38, %v403_v13  ;;  %vm402_vm4 = vcmp.eq.f32.partialorder %v401_v15, 8.507059e+37 }
 0x786   :  { %v1438_v4 = vpop.eup %1437 }
 0x787   :  { %v393_v6 = vmul.f32 %v1438_v4, %v391_v2  ;;  %vm398_vm15 = vweird.f32 %v1438_v4 }
 0x788   :  { %vm399_vm3 = vmor %vm397_vm2, %vm398_vm15 }
 0x789   :  { %v394_v7 = vsub.f32 1.0, %v393_v6 }
 0x78b   :  { %v395_v9 = vmul.f32 %v1438_v4, %v394_v7 }
 0x78d   :  { %v396_v11 = vadd.f32 %v1438_v4, %v395_v9 }
 0x78f   :  { %v400_v16 = vsel %vm399_vm3, %v1438_v4, %v396_v11 }
 0x790   :  { %v405_v21 = vsel %vm402_vm4, %v404_v18, %v400_v16 }
 0x791   :  { %v408_v23 = vmul.f32 %v405_v21, %v1753_v17 }
 0x7d6   :  { %v411_v19 = vpop.permute.xlu2 %410 }
 0x7d7   :  { %v413_v22 = vmul.f32 %v411_v19, %v405_v21 }
 0x7d9   :  { %415 = vrot.lane.b32.xlu0 %v413_v22, %s1544_s18 }
 0x84b   :  { %v416_v24 = vpop.permute.xlu0 %415 }
 0x84c   :  { %v1794_v25 = vadd.f32 %v416_v24, %v408_v23 }
 0x84e   :  { %1439 = vtanh.f32 %v1794_v25 }
 0x854   :  { %v1440_v26 = vpop.eup %1439 }
 0x855   :  { %421 = vrot.lane.b32.xlu1 %v1440_v26, %s1544_s18 }
 0x8c7   :  { %v422_v27 = vpop.permute.xlu1 %421 }
 0x8c8   :  { %v1798_v28 = vmul.f32 %v422_v27, %v405_v21 }
 0x8ca   :  { %426 = vrot.lane.b32.xlu2 %v1798_v28, %s1546_s13 }
 0x924   :  { %v427_v17 = vpop.permute.xlu2 %426 }
 0x925   :  { %429 = vst.msk [vmem:[#allocation2] sm:$0xff] %vm282_vm10, %v427_v17 }
 0x92c   :  { %v445_v30 = vld [vmem:[#allocation2] sm:$0xff] }
 0x92d   :  { %1363 = vmatmul.msk.f32.vlgmr.msrb.gmra.mxu3 %vm29_vm1, %v445_v30  ;;  %v1849_v30 = vld [vmem:[%s2101_s0 + $0x18] sm:$0xff] }
 0x92e   :  { %757 = vmatpush.msrb.mxu3 %v1592_v3  ;;  %1348 = vmatmul.msk.f32.gmra.mxu0 %vm29_vm1, %v1849_v30 }
 0x930   :  { %758 = vmatpush.msrb.mxu3 %v1603_v5 }
 0x932   :  { %759 = vmatpush.msrb.mxu3 %v1615_v8 }
 0x934   :  { %760 = vmatpush.msrb.mxu3 %v1626_v10 }
 0x9b0   :  { %v466_v33 = vpop.f32.mrf.mxu3 }
 0x9b1   :  { %v469_v34 = vadd.f32 %v466_v33, %v113_v32  ;;  %v115_v32 = vpop.f32.mrf.mxu0 }
 0x9b2   :  { %v116_v33 = vadd.f32 %v1643_v14, %v115_v32 }
 0x9b3   :  { %1441 = vtanh.f32 %v469_v34  ;;  %v1364_v36 = vmul.f32 -1.442695, %v469_v34 }
 0x9b5   :  { %1443 = vpow2.f32 %v1364_v36 }
 0x9b9   :  { %v1442_v35 = vpop.eup %1441 }
 0x9ba   :  { %492 = vrot.lane.b32.xlu0 %v1442_v35, %s1544_s18 }
 0x9bb   :  { %v1444_v37 = vpop.eup %1443 }
 0x9bc   :  { %v473_v39 = vadd.f32 1.0, %v1444_v37 }
 0x9be   :  { %1445 = vrcp.f32 %v473_v39  ;;  %v485_v54 = vand.u32 2147483648, %v473_v39  ;;  %vm479_vm6 = vweird.f32 %v473_v39  ;;  %v483_v55 = vand.u32 2147483647, %v473_v39 }
 0x9c0   :  { %v486_v58 = vor.u32 1.1754944e-38, %v485_v54  ;;  %vm484_vm8 = vcmp.eq.f32.partialorder %v483_v55, 8.507059e+37 }
 0x9c4   :  { %v1446_v44 = vpop.eup %1445 }
 0x9c5   :  { %v475_v45 = vmul.f32 %v1446_v44, %v473_v39  ;;  %vm480_vm5 = vweird.f32 %v1446_v44 }
 0x9c6   :  { %vm481_vm7 = vmor %vm479_vm6, %vm480_vm5 }
 0x9c7   :  { %v476_v50 = vsub.f32 1.0, %v475_v45 }
 0x9c9   :  { %v477_v51 = vmul.f32 %v1446_v44, %v476_v50 }
 0x9cb   :  { %v478_v52 = vadd.f32 %v1446_v44, %v477_v51 }
 0x9cd   :  { %v482_v57 = vsel %vm481_vm7, %v1446_v44, %v478_v52 }
 0x9ce   :  { %v487_v60 = vsel %vm484_vm8, %v486_v58, %v482_v57 }
 0x9cf   :  { %v490_v38 = vmul.f32 %v487_v60, %v1775_v56 }
 0xa2c   :  { %v493_v59 = vpop.permute.xlu0 %492 }
 0xa2d   :  { %v495_v61 = vmul.f32 %v493_v59, %v487_v60 }
 0xa2f   :  { %497 = vrot.lane.b32.xlu1 %v495_v61, %s1544_s18 }
 0xaa1   :  { %v498_v62 = vpop.permute.xlu1 %497 }
 0xaa2   :  { %v1819_v63 = vadd.f32 %v498_v62, %v490_v38 }
 0xaa4   :  { %1447 = vtanh.f32 %v1819_v63 }
 0xaaa   :  { %v1448_v0 = vpop.eup %1447 }
 0xaab   :  { %503 = vrot.lane.b32.xlu2 %v1448_v0, %s1544_s18 }
 0xb05   :  { %v504_v1 = vpop.permute.xlu2 %503 }
 0xb06   :  { %v506_v2 = vmul.f32 %v504_v1, %v487_v60 }
 0xb08   :  { %508 = vrot.lane.b32.xlu0 %v506_v2, %s1545_s27 }
 0xb7a   :  { %v509_v4 = vpop.permute.xlu0 %508 }
 0xb7b   :  { %511 = vst.msk [vmem:[#allocation2] sm:$0xff] %vm29_vm1, %v509_v4 }
 0xb82   :  { %v512_v6 = vld [vmem:[#allocation2] sm:$0xff] }
 0xb83   :  { %1365 = vmatmul.msk.f32.vlgmr.msrb.gmra.mxu2 %vm27_vm0, %v512_v6 }
 0xb84   :  { %1116 = vmatpush.msrb.mxu2 %v1656_v40 }
 0xb86   :  { %1117 = vmatpush.msrb.mxu2 %v1661_v41 }
 0xb88   :  { %1118 = vmatpush.msrb.mxu2 %v1668_v42 }
 0xb8a   :  { %1119 = vmatpush.msrb.mxu2 %v1676_v43 }
 0xb8c   :  { %1120 = vmatpush.msrb.mxu2 %v1689_v46 }
 0xb8e   :  { %1121 = vmatpush.msrb.mxu2 %v1694_v47 }
 0xb90   :  { %1122 = vmatpush.msrb.mxu2 %v1701_v48 }
 0xb92   :  { %1123 = vmatpush.msrb.mxu2 %v1709_v49 }
 0xc06   :  { %v533_v56 = vpop.f32.mrf.mxu2 }
 0xc07   :  { %v534_v7 = vadd.f32 %v1748_v53, %v533_v56 }
 0xc09   :  { %1449 = vtanh.f32 %v534_v7  ;;  %v1366_v40 = vmul.f32 -1.442695, %v534_v7 }
 0xc0b   :  { %1451 = vpow2.f32 %v1366_v40 }
 0xc0f   :  { %v1450_v9 = vpop.eup %1449 }
 0xc10   :  { %558 = vrot.lane.b32.xlu1 %v1450_v9, %s1544_s18 }
 0xc11   :  { %v1452_v41 = vpop.eup %1451 }
 0xc12   :  { %v539_v42 = vadd.f32 1.0, %v1452_v41 }
 0xc14   :  { %1453 = vrcp.f32 %v539_v42  ;;  %v551_v48 = vand.u32 2147483648, %v539_v42  ;;  %vm545_vm11 = vweird.f32 %v539_v42  ;;  %v549_v49 = vand.u32 2147483647, %v539_v42 }
 0xc16   :  { %v552_v16 = vor.u32 1.1754944e-38, %v551_v48  ;;  %vm550_vm13 = vcmp.eq.f32.partialorder %v549_v49, 8.507059e+37 }
 0xc1a   :  { %v1454_v43 = vpop.eup %1453 }
 0xc1b   :  { %v541_v46 = vmul.f32 %v1454_v43, %v539_v42  ;;  %vm546_vm9 = vweird.f32 %v1454_v43 }
 0xc1c   :  { %vm547_vm12 = vmor %vm545_vm11, %vm546_vm9 }
 0xc1d   :  { %v542_v11 = vsub.f32 1.0, %v541_v46 }
 0xc1f   :  { %v543_v47 = vmul.f32 %v1454_v43, %v542_v11 }
 0xc21   :  { %v544_v13 = vadd.f32 %v1454_v43, %v543_v47 }
 0xc23   :  { %v548_v15 = vsel %vm547_vm12, %v1454_v43, %v544_v13 }
 0xc24   :  { %v553_v19 = vsel %vm550_vm13, %v552_v16, %v548_v15 }
 0xc25   :  { %v556_v22 = vmul.f32 %v553_v19, %v1794_v25 }
 0xc82   :  { %v559_v18 = vpop.permute.xlu1 %558 }
 0xc83   :  { %v561_v21 = vmul.f32 %v559_v18, %v553_v19 }
 0xc85   :  { %563 = vrot.lane.b32.xlu2 %v561_v21, %s1544_s18 }
 0xcdf   :  { %v564_v23 = vpop.permute.xlu2 %563 }
 0xce0   :  { %v1838_v24 = vadd.f32 %v564_v23, %v556_v22 }
 0xce2   :  { %1455 = vtanh.f32 %v1838_v24 }
 0xce8   :  { %v1456_v26 = vpop.eup %1455 }
 0xce9   :  { %569 = vrot.lane.b32.xlu0 %v1456_v26, %s1544_s18 }
 0xd5b   :  { %v570_v27 = vpop.permute.xlu0 %569 }
 0xd5c   :  { %v1842_v17 = vmul.f32 %v570_v27, %v553_v19 }
 0xd5e   :  { %574 = vrot.lane.b32.xlu1 %v1842_v17, %s1546_s13 }
 0xdd0   :  { %v575_v25 = vpop.permute.xlu1 %574 }
 0xdd1   :  { %577 = vst.msk [vmem:[#allocation2] sm:$0xff] %vm282_vm10, %v575_v25 }
 0xdd8   :  { %v593_v31 = vld [vmem:[#allocation2] sm:$0xff] }
 0xdd9   :  { %1369 = vmatmul.msk.f32.vlgmr.msra.gmra.mxu3 %vm29_vm1, %v593_v31 }
 0xdda   :  { %905 = vmatpush.msra.mxu3 %v1592_v3 }
 0xddc   :  { %906 = vmatpush.msra.mxu3 %v1603_v5 }
 0xdde   :  { %907 = vmatpush.msra.mxu3 %v1615_v8 }
 0xde0   :  { %908 = vmatpush.msra.mxu3 %v1626_v10 }
 0xe5c   :  { %v614_v34 = vpop.f32.mrf.mxu3 }
 0xe5d   :  { %v617_v35 = vadd.f32 %v614_v34, %v116_v33  ;;  %v1885_v33 = vld [vmem:[%s2101_s0 + $0x20] sm:$0xff] }
 0xe5e   :  { %1349 = vmatmul.msk.f32.gmra.mxu0 %vm29_vm1, %v1885_v33 }
 0xe5f   :  { %1457 = vtanh.f32 %v617_v35  ;;  %v1370_v37 = vmul.f32 -1.442695, %v617_v35 }
 0xe61   :  { %1459 = vpow2.f32 %v1370_v37 }
 0xe65   :  { %v1458_v36 = vpop.eup %1457 }
 0xe66   :  { %640 = vrot.lane.b32.xlu2 %v1458_v36, %s1544_s18 }
 0xe67   :  { %v1460_v39 = vpop.eup %1459 }
 0xe68   :  { %v621_v44 = vadd.f32 1.0, %v1460_v39 }
 0xe6a   :  { %1461 = vrcp.f32 %v621_v44  ;;  %v633_v55 = vand.u32 2147483648, %v621_v44  ;;  %vm627_vm15 = vweird.f32 %v621_v44  ;;  %v631_v57 = vand.u32 2147483647, %v621_v44 }
 0xe6c   :  { %v634_v59 = vor.u32 1.1754944e-38, %v633_v55  ;;  %vm632_vm3 = vcmp.eq.f32.partialorder %v631_v57, 8.507059e+37 }
 0xe70   :  { %v1462_v45 = vpop.eup %1461 }
 0xe71   :  { %v623_v50 = vmul.f32 %v1462_v45, %v621_v44  ;;  %vm628_vm14 = vweird.f32 %v1462_v45 }
 0xe72   :  { %vm629_vm2 = vmor %vm627_vm15, %vm628_vm14 }
 0xe73   :  { %v624_v51 = vsub.f32 1.0, %v623_v50 }
 0xe75   :  { %v625_v52 = vmul.f32 %v1462_v45, %v624_v51 }
 0xe77   :  { %v626_v54 = vadd.f32 %v1462_v45, %v625_v52 }
 0xe79   :  { %v630_v58 = vsel %vm629_vm2, %v1462_v45, %v626_v54 }
 0xe7a   :  { %v635_v61 = vsel %vm632_vm3, %v634_v59, %v630_v58 }
 0xe7b   :  { %v638_v62 = vmul.f32 %v635_v61, %v1819_v63 }
 0xec0   :  { %v641_v60 = vpop.permute.xlu2 %640 }
 0xec1   :  { %v643_v38 = vmul.f32 %v641_v60, %v635_v61 }
 0xec3   :  { %645 = vrot.lane.b32.xlu0 %v643_v38, %s1544_s18 }
 0xedb   :  { %v118_v35 = vpop.f32.mrf.mxu0 }
 0xedc   :  { %v119_v36 = vadd.f32 %v1643_v14, %v118_v35  ;;  %v1537_v35 = vld [vmem:[%s2100_s2 + $0x18] sm:$0xff] }
 0xf35   :  { %v646_v0 = vpop.permute.xlu0 %645 }
 0xf36   :  { %v1863_v1 = vadd.f32 %v646_v0, %v638_v62 }
 0xf38   :  { %1463 = vtanh.f32 %v1863_v1 }
 0xf3e   :  { %v1464_v2 = vpop.eup %1463 }
 0xf3f   :  { %651 = vrot.lane.b32.xlu1 %v1464_v2, %s1544_s18 }
 0xfb1   :  { %v652_v4 = vpop.permute.xlu1 %651 }
 0xfb2   :  { %v654_v6 = vmul.f32 %v652_v4, %v635_v61 }
 0xfb4   :  { %656 = vrot.lane.b32.xlu2 %v654_v6, %s1545_s27 }
0x100e   :  { %v657_v56 = vpop.permute.xlu2 %656 }
0x100f   :  { %659 = vst.msk [vmem:[#allocation2] sm:$0xff] %vm29_vm1, %v657_v56 }
0x1016   :  { %v660_v7 = vld [vmem:[#allocation2] sm:$0xff] }
0x1017   :  { %1371 = vmatmul.msk.f32.vlgmr.msrb.gmra.mxu1 %vm27_vm0, %v660_v7 }
0x1094   :  { %v681_v9 = vpop.f32.mrf.mxu1 }
0x1095   :  { %v682_v63 = vadd.f32 %v1748_v53, %v681_v9 }
0x1097   :  { %1465 = vtanh.f32 %v682_v63  ;;  %v1372_v41 = vmul.f32 -1.442695, %v682_v63 }
0x1099   :  { %1467 = vpow2.f32 %v1372_v41 }
0x109d   :  { %v1466_v40 = vpop.eup %1465 }
0x109e   :  { %706 = vrot.lane.b32.xlu0 %v1466_v40, %s1544_s18 }
0x109f   :  { %v1468_v42 = vpop.eup %1467 }
0x10a0   :  { %v687_v43 = vadd.f32 1.0, %v1468_v42 }
0x10a2   :  { %1469 = vrcp.f32 %v687_v43  ;;  %v699_v49 = vand.u32 2147483648, %v687_v43  ;;  %vm693_vm5 = vweird.f32 %v687_v43  ;;  %v697_v15 = vand.u32 2147483647, %v687_v43 }
0x10a4   :  { %v700_v18 = vor.u32 1.1754944e-38, %v699_v49  ;;  %vm698_vm7 = vcmp.eq.f32.partialorder %v697_v15, 8.507059e+37 }
0x10a8   :  { %v1470_v46 = vpop.eup %1469 }
0x10a9   :  { %v689_v11 = vmul.f32 %v1470_v46, %v687_v43  ;;  %vm694_vm4 = vweird.f32 %v1470_v46 }
0x10aa   :  { %vm695_vm6 = vmor %vm693_vm5, %vm694_vm4 }
0x10ab   :  { %v690_v47 = vsub.f32 1.0, %v689_v11 }
0x10ad   :  { %v691_v13 = vmul.f32 %v1470_v46, %v690_v47 }
0x10af   :  { %v692_v48 = vadd.f32 %v1470_v46, %v691_v13 }
0x10b1   :  { %v696_v16 = vsel %vm695_vm6, %v1470_v46, %v692_v48 }
0x10b2   :  { %v701_v21 = vsel %vm698_vm7, %v700_v18, %v696_v16 }
0x10b3   :  { %v704_v23 = vmul.f32 %v701_v21, %v1838_v24 }
0x1110   :  { %v707_v19 = vpop.permute.xlu0 %706 }
0x1111   :  { %v709_v22 = vmul.f32 %v707_v19, %v701_v21 }
0x1113   :  { %711 = vrot.lane.b32.xlu1 %v709_v22, %s1544_s18 }
0x1185   :  { %v712_v26 = vpop.permute.xlu1 %711 }
0x1186   :  { %v1874_v27 = vadd.f32 %v712_v26, %v704_v23 }
0x1188   :  { %1471 = vtanh.f32 %v1874_v27 }
0x118e   :  { %v1472_v25 = vpop.eup %1471 }
0x118f   :  { %717 = vrot.lane.b32.xlu2 %v1472_v25, %s1544_s18 }
0x11e9   :  { %v718_v31 = vpop.permute.xlu2 %717 }
0x11ea   :  { %v1878_v32 = vmul.f32 %v718_v31, %v701_v21 }
0x11ec   :  { %722 = vrot.lane.b32.xlu0 %v1878_v32, %s1546_s13 }
0x125e   :  { %v723_v24 = vpop.permute.xlu0 %722 }
0x125f   :  { %725 = vst.msk [vmem:[#allocation2] sm:$0xff] %vm282_vm10, %v723_v24  ;;  %v1921_v24 = vld [vmem:[%s2101_s0 + $0x28] sm:$0xff] }
0x1260   :  { %1350 = vmatmul.msk.f32.gmra.mxu0 %vm29_vm1, %v1921_v24 }
0x1266   :  { %v741_v34 = vld [vmem:[#allocation2] sm:$0xff] }
0x1267   :  { %1375 = vmatmul.msk.f32.vlgmr.msrb.gmra.mxu3 %vm29_vm1, %v741_v34 }
0x1268   :  { %1053 = vmatpush.msrb.mxu3 %v1592_v3 }
0x126a   :  { %1054 = vmatpush.msrb.mxu3 %v1603_v5 }
0x126c   :  { %1055 = vmatpush.msrb.mxu3 %v1615_v8 }
0x126e   :  { %1056 = vmatpush.msrb.mxu3 %v1626_v10 }
0x12ea   :  { %v762_v37 = vpop.f32.mrf.mxu3 }
0x12eb   :  { %v765_v39 = vadd.f32 %v762_v37, %v119_v36  ;;  %v1538_v36 = vld [vmem:[%s2100_s2 + $0x10] sm:$0xff]  ;;  %v1539_v37 = vld [vmem:[%s2100_s2 + $0x8] sm:$0xff] }
0x12ed   :  { %1473 = vtanh.f32 %v765_v39  ;;  %v1376_v45 = vmul.f32 -1.442695, %v765_v39  ;;  %v1540_v39 = vld [vmem:[%s2100_s2] sm:$0xff] }
0x12ef   :  { %1475 = vpow2.f32 %v1376_v45  ;;  %v1942_v45 = vld [vmem:[%s2102_s4] ss:$0 sm:$0xff] }
0x12f3   :  { %v1474_v44 = vpop.eup %1473 }
0x12f4   :  { %788 = vrot.lane.b32.xlu1 %v1474_v44, %s1544_s18  ;;  %v121_v44 = vpop.f32.mrf.mxu0 }
0x12f5   :  { %v1476_v50 = vpop.eup %1475 }
0x12f6   :  { %v769_v51 = vadd.f32 1.0, %v1476_v50  ;;  %v122_v50 = vadd.f32 %v1942_v45, %v121_v44  ;;  %v1970_v44 = vld [vmem:[%s2101_s0 + $0x30] sm:$0xff] }
0x12f7   :  { %1351 = vmatmul.msk.f32.gmra.mxu0 %vm29_vm1, %v1970_v44 }
0x12f8   :  { %1477 = vrcp.f32 %v769_v51  ;;  %v781_v10 = vand.u32 2147483648, %v769_v51  ;;  %vm775_vm9 = vweird.f32 %v769_v51  ;;  %v779_v14 = vand.u32 2147483647, %v769_v51 }
0x12fa   :  { %v782_v57 = vor.u32 1.1754944e-38, %v781_v10  ;;  %vm780_vm12 = vcmp.eq.f32.partialorder %v779_v14, 8.507059e+37 }
0x12fe   :  { %v1478_v3 = vpop.eup %1477 }
0x12ff   :  { %v771_v5 = vmul.f32 %v1478_v3, %v769_v51  ;;  %vm776_vm8 = vweird.f32 %v1478_v3 }
0x1300   :  { %vm777_vm11 = vmor %vm775_vm9, %vm776_vm8 }
0x1301   :  { %v772_v52 = vsub.f32 1.0, %v771_v5 }
0x1303   :  { %v773_v8 = vmul.f32 %v1478_v3, %v772_v52 }
0x1305   :  { %v774_v54 = vadd.f32 %v1478_v3, %v773_v8 }
0x1307   :  { %v778_v55 = vsel %vm777_vm11, %v1478_v3, %v774_v54 }
0x1308   :  { %v783_v59 = vsel %vm780_vm12, %v782_v57, %v778_v55 }
0x1309   :  { %v786_v61 = vmul.f32 %v783_v59, %v1863_v1 }
0x1366   :  { %v789_v58 = vpop.permute.xlu1 %788 }
0x1367   :  { %v791_v60 = vmul.f32 %v789_v58, %v783_v59 }
0x1369   :  { %793 = vrot.lane.b32.xlu2 %v791_v60, %s1544_s18 }
0x13c3   :  { %v794_v38 = vpop.permute.xlu2 %793 }
0x13c4   :  { %v1899_v62 = vadd.f32 %v794_v38, %v786_v61 }
0x13c6   :  { %1479 = vtanh.f32 %v1899_v62 }
0x13cc   :  { %v1480_v0 = vpop.eup %1479 }
0x13cd   :  { %799 = vrot.lane.b32.xlu0 %v1480_v0, %s1544_s18 }
0x143f   :  { %v800_v2 = vpop.permute.xlu0 %799 }
0x1440   :  { %v802_v4 = vmul.f32 %v800_v2, %v783_v59 }
0x1442   :  { %804 = vrot.lane.b32.xlu1 %v802_v4, %s1545_s27 }
0x14b4   :  { %v805_v6 = vpop.permute.xlu1 %804 }
0x14b5   :  { %807 = vst.msk [vmem:[#allocation2] sm:$0xff] %vm29_vm1, %v805_v6 }
0x14bc   :  { %v808_v56 = vld [vmem:[#allocation2] sm:$0xff] }
0x14bd   :  { %1377 = vmatmul.msk.f32.vlgmr.msra.gmra.mxu2 %vm27_vm0, %v808_v56 }
0x1540   :  { %v829_v7 = vpop.f32.mrf.mxu2 }
0x1541   :  { %v830_v1 = vadd.f32 %v1748_v53, %v829_v7 }
0x1543   :  { %1481 = vtanh.f32 %v830_v1  ;;  %v1378_v63 = vmul.f32 -1.442695, %v830_v1 }
0x1545   :  { %1483 = vpow2.f32 %v1378_v63 }
0x1549   :  { %v1482_v9 = vpop.eup %1481 }
0x154a   :  { %854 = vrot.lane.b32.xlu2 %v1482_v9, %s1544_s18 }
0x154b   :  { %v1484_v40 = vpop.eup %1483 }
0x154c   :  { %v835_v41 = vadd.f32 1.0, %v1484_v40 }
0x154e   :  { %1485 = vrcp.f32 %v835_v41  ;;  %v847_v13 = vand.u32 2147483648, %v835_v41  ;;  %vm841_vm14 = vweird.f32 %v835_v41  ;;  %v845_v48 = vand.u32 2147483647, %v835_v41 }
0x1550   :  { %v848_v15 = vor.u32 1.1754944e-38, %v847_v13  ;;  %vm846_vm2 = vcmp.eq.f32.partialorder %v845_v48, 8.507059e+37 }
0x1554   :  { %v1486_v42 = vpop.eup %1485 }
0x1555   :  { %v837_v43 = vmul.f32 %v1486_v42, %v835_v41  ;;  %vm842_vm13 = vweird.f32 %v1486_v42 }
0x1556   :  { %vm843_vm15 = vmor %vm841_vm14, %vm842_vm13 }
0x1557   :  { %v838_v46 = vsub.f32 1.0, %v837_v43 }
0x1559   :  { %v839_v11 = vmul.f32 %v1486_v42, %v838_v46 }
0x155b   :  { %v840_v47 = vadd.f32 %v1486_v42, %v839_v11 }
0x155d   :  { %v844_v49 = vsel %vm843_vm15, %v1486_v42, %v840_v47 }
0x155e   :  { %v849_v18 = vsel %vm846_vm2, %v848_v15, %v844_v49 }
0x155f   :  { %v852_v21 = vmul.f32 %v849_v18, %v1874_v27 }
0x15a4   :  { %v855_v16 = vpop.permute.xlu2 %854 }
0x15a5   :  { %v857_v19 = vmul.f32 %v855_v16, %v849_v18 }
0x15a7   :  { %859 = vrot.lane.b32.xlu0 %v857_v19, %s1544_s18 }
0x1619   :  { %v860_v22 = vpop.permute.xlu0 %859 }
0x161a   :  { %v1910_v23 = vadd.f32 %v860_v22, %v852_v21 }
0x161c   :  { %1487 = vtanh.f32 %v1910_v23 }
0x1622   :  { %v1488_v26 = vpop.eup %1487 }
0x1623   :  { %865 = vrot.lane.b32.xlu1 %v1488_v26, %s1544_s18 }
0x1695   :  { %v866_v25 = vpop.permute.xlu1 %865 }
0x1696   :  { %v1914_v31 = vmul.f32 %v866_v25, %v849_v18 }
0x1698   :  { %870 = vrot.lane.b32.xlu2 %v1914_v31, %s1546_s13 }
0x16f2   :  { %v871_v27 = vpop.permute.xlu2 %870 }
0x16f3   :  { %873 = vst.msk [vmem:[#allocation2] sm:$0xff] %vm282_vm10, %v871_v27 }
0x16fa   :  { %v889_v34 = vld [vmem:[#allocation2] sm:$0xff] }
0x16fb   :  { %1381 = vmatmul.msk.f32.vlgmr.msra.gmra.mxu3 %vm29_vm1, %v889_v34 }
0x16fc   :  { %1201 = vmatpush.msra.mxu3 %v1537_v35 }
0x16fe   :  { %1202 = vmatpush.msra.mxu3 %v1538_v36 }
0x1700   :  { %1203 = vmatpush.msra.mxu3 %v1539_v37 }
0x1702   :  { %1204 = vmatpush.msra.mxu3 %v1540_v39 }
0x177e   :  { %v910_v51 = vpop.f32.mrf.mxu3 }
0x177f   :  { %v913_v3 = vadd.f32 %v910_v51, %v122_v50  ;;  %v124_v51 = vpop.f32.mrf.mxu0 }
0x1781   :  { %1489 = vtanh.f32 %v913_v3  ;;  %v1382_v52 = vmul.f32 -1.442695, %v913_v3  ;;  %v125_v3 = vadd.f32 %v1942_v45, %v124_v51 }
0x1783   :  { %1491 = vpow2.f32 %v1382_v52 }
0x1787   :  { %v1490_v5 = vpop.eup %1489 }
0x1788   :  { %936 = vrot.lane.b32.xlu0 %v1490_v5, %s1544_s18 }
0x1789   :  { %v1492_v8 = vpop.eup %1491 }
0x178a   :  { %v917_v54 = vadd.f32 1.0, %v1492_v8 }
0x178c   :  { %1493 = vrcp.f32 %v917_v54  ;;  %v929_v59 = vand.u32 2147483648, %v917_v54  ;;  %vm923_vm4 = vweird.f32 %v917_v54  ;;  %v927_v60 = vand.u32 2147483647, %v917_v54 }
0x178e   :  { %v930_v38 = vor.u32 1.1754944e-38, %v929_v59  ;;  %vm928_vm6 = vcmp.eq.f32.partialorder %v927_v60, 8.507059e+37 }
0x1792   :  { %v1494_v10 = vpop.eup %1493 }
0x1793   :  { %v919_v14 = vmul.f32 %v1494_v10, %v917_v54  ;;  %vm924_vm3 = vweird.f32 %v1494_v10 }
0x1794   :  { %vm925_vm5 = vmor %vm923_vm4, %vm924_vm3 }
0x1795   :  { %v920_v55 = vsub.f32 1.0, %v919_v14 }
0x1797   :  { %v921_v57 = vmul.f32 %v1494_v10, %v920_v55 }
0x1799   :  { %v922_v58 = vadd.f32 %v1494_v10, %v921_v57 }
0x179b   :  { %v926_v61 = vsel %vm925_vm5, %v1494_v10, %v922_v58 }
0x179c   :  { %v931_v2 = vsel %vm928_vm6, %v930_v38, %v926_v61 }
0x179d   :  { %v934_v6 = vmul.f32 %v931_v2, %v1899_v62 }
0x17fa   :  { %v937_v0 = vpop.permute.xlu0 %936 }
0x17fb   :  { %v939_v4 = vmul.f32 %v937_v0, %v931_v2 }
0x17fd   :  { %941 = vrot.lane.b32.xlu1 %v939_v4, %s1544_s18 }
0x186f   :  { %v942_v56 = vpop.permute.xlu1 %941 }
0x1870   :  { %v1948_v7 = vadd.f32 %v942_v56, %v934_v6 }
0x1872   :  { %1495 = vtanh.f32 %v1948_v7 }
0x1878   :  { %v1496_v1 = vpop.eup %1495 }
0x1879   :  { %947 = vrot.lane.b32.xlu2 %v1496_v1, %s1544_s18 }
0x18d3   :  { %v948_v9 = vpop.permute.xlu2 %947 }
0x18d4   :  { %v950_v63 = vmul.f32 %v948_v9, %v931_v2 }
0x18d6   :  { %952 = vrot.lane.b32.xlu0 %v950_v63, %s1545_s27 }
0x1948   :  { %v953_v40 = vpop.permute.xlu0 %952 }
0x1949   :  { %955 = vst.msk [vmem:[#allocation2] sm:$0xff] %vm29_vm1, %v953_v40 }
0x1950   :  { %v956_v41 = vld [vmem:[#allocation2] sm:$0xff] }
0x1951   :  { %1383 = vmatmul.msk.f32.vlgmr.msra.gmra.mxu1 %vm27_vm0, %v956_v41 }
0x19ce   :  { %v977_v42 = vpop.f32.mrf.mxu1 }
0x19cf   :  { %v978_v62 = vadd.f32 %v1748_v53, %v977_v42 }
0x19d1   :  { %1497 = vtanh.f32 %v978_v62  ;;  %v1384_v46 = vmul.f32 -1.442695, %v978_v62 }
0x19d3   :  { %1499 = vpow2.f32 %v1384_v46 }
0x19d7   :  { %v1498_v43 = vpop.eup %1497 }
0x19d8   :  { %1002 = vrot.lane.b32.xlu1 %v1498_v43, %s1544_s18 }
0x19d9   :  { %v1500_v11 = vpop.eup %1499 }
0x19da   :  { %v983_v47 = vadd.f32 1.0, %v1500_v11 }
0x19dc   :  { %1501 = vrcp.f32 %v983_v47  ;;  %v995_v18 = vand.u32 2147483648, %v983_v47  ;;  %vm989_vm8 = vweird.f32 %v983_v47  ;;  %v993_v19 = vand.u32 2147483647, %v983_v47 }
0x19de   :  { %v996_v21 = vor.u32 1.1754944e-38, %v995_v18  ;;  %vm994_vm11 = vcmp.eq.f32.partialorder %v993_v19, 8.507059e+37 }
0x19e2   :  { %v1502_v13 = vpop.eup %1501 }
0x19e3   :  { %v985_v48 = vmul.f32 %v1502_v13, %v983_v47  ;;  %vm990_vm7 = vweird.f32 %v1502_v13 }
0x19e4   :  { %vm991_vm9 = vmor %vm989_vm8, %vm990_vm7 }
0x19e5   :  { %v986_v49 = vsub.f32 1.0, %v985_v48 }
0x19e7   :  { %v987_v15 = vmul.f32 %v1502_v13, %v986_v49 }
0x19e9   :  { %v988_v16 = vadd.f32 %v1502_v13, %v987_v15 }
0x19eb   :  { %v992_v53 = vsel %vm991_vm9, %v1502_v13, %v988_v16 }
0x19ec   :  { %v997_v26 = vsel %vm994_vm11, %v996_v21, %v992_v53 }
0x19ed   :  { %v1000_v27 = vmul.f32 %v997_v26, %v1910_v23 }
0x1a4a   :  { %v1003_v22 = vpop.permute.xlu1 %1002 }
0x1a4b   :  { %v1005_v25 = vmul.f32 %v1003_v22, %v997_v26 }
0x1a4d   :  { %1007 = vrot.lane.b32.xlu2 %v1005_v25, %s1544_s18 }
0x1aa7   :  { %v1008_v34 = vpop.permute.xlu2 %1007 }
0x1aa8   :  { %v1959_v35 = vadd.f32 %v1008_v34, %v1000_v27 }
0x1aaa   :  { %1503 = vtanh.f32 %v1959_v35 }
0x1ab0   :  { %v1504_v36 = vpop.eup %1503 }
0x1ab1   :  { %1013 = vrot.lane.b32.xlu0 %v1504_v36, %s1544_s18 }
0x1b23   :  { %v1014_v37 = vpop.permute.xlu0 %1013 }
0x1b24   :  { %v1963_v39 = vmul.f32 %v1014_v37, %v997_v26 }
0x1b26   :  { %1018 = vrot.lane.b32.xlu1 %v1963_v39, %s1546_s13 }
0x1b98   :  { %v1019_v23 = vpop.permute.xlu1 %1018 }
0x1b99   :  { %1021 = vst.msk [vmem:[#allocation2] sm:$0xff] %vm282_vm10, %v1019_v23 }
0x1ba0   :  { %v1037_v50 = vld [vmem:[#allocation2] sm:$0xff] }
0x1ba1   :  { %1387 = vmatmul.msk.f32.vlgmr.msrb.gmra.mxu3 %vm29_vm1, %v1037_v50 }
0x1c24   :  { %v1058_v5 = vpop.f32.mrf.mxu3 }
0x1c25   :  { %v1061_v52 = vadd.f32 %v1058_v5, %v125_v3 }
0x1c27   :  { %1505 = vtanh.f32 %v1061_v52  ;;  %v1388_v54 = vmul.f32 -1.442695, %v1061_v52 }
0x1c29   :  { %1507 = vpow2.f32 %v1388_v54 }
0x1c2d   :  { %v1506_v8 = vpop.eup %1505 }
0x1c2e   :  { %1084 = vrot.lane.b32.xlu2 %v1506_v8, %s1544_s18 }
0x1c2f   :  { %v1508_v10 = vpop.eup %1507 }
0x1c30   :  { %v1065_v14 = vadd.f32 1.0, %v1508_v10 }
0x1c32   :  { %1509 = vrcp.f32 %v1065_v14  ;;  %v1077_v61 = vand.u32 2147483648, %v1065_v14  ;;  %vm1071_vm13 = vweird.f32 %v1065_v14  ;;  %v1075_v38 = vand.u32 2147483647, %v1065_v14 }
0x1c34   :  { %v1078_v2 = vor.u32 1.1754944e-38, %v1077_v61  ;;  %vm1076_vm15 = vcmp.eq.f32.partialorder %v1075_v38, 8.507059e+37 }
0x1c38   :  { %v1510_v55 = vpop.eup %1509 }
0x1c39   :  { %v1067_v57 = vmul.f32 %v1510_v55, %v1065_v14  ;;  %vm1072_vm12 = vweird.f32 %v1510_v55 }
0x1c3a   :  { %vm1073_vm14 = vmor %vm1071_vm13, %vm1072_vm12 }
0x1c3b   :  { %v1068_v58 = vsub.f32 1.0, %v1067_v57 }
0x1c3d   :  { %v1069_v59 = vmul.f32 %v1510_v55, %v1068_v58 }
0x1c3f   :  { %v1070_v60 = vadd.f32 %v1510_v55, %v1069_v59 }
0x1c41   :  { %v1074_v0 = vsel %vm1073_vm14, %v1510_v55, %v1070_v60 }
0x1c42   :  { %v1079_v6 = vsel %vm1076_vm15, %v1078_v2, %v1074_v0 }
0x1c43   :  { %v1082_v1 = vmul.f32 %v1079_v6, %v1948_v7  ;;  %v1990_v7 = vld [vmem:[%s2104_s5] ss:$0 sm:$0xff] }
0x1c88   :  { %v1085_v4 = vpop.permute.xlu2 %1084 }
0x1c89   :  { %v1087_v56 = vmul.f32 %v1085_v4, %v1079_v6 }
0x1c8b   :  { %1089 = vrot.lane.b32.xlu0 %v1087_v56, %s1544_s18 }
0x1cfd   :  { %v1090_v9 = vpop.permute.xlu0 %1089 }
0x1cfe   :  { %v1980_v63 = vadd.f32 %v1090_v9, %v1082_v1 }
0x1d00   :  { %1511 = vtanh.f32 %v1980_v63 }
0x1d06   :  { %v1512_v40 = vpop.eup %1511 }
0x1d07   :  { %1095 = vrot.lane.b32.xlu1 %v1512_v40, %s1544_s18 }
0x1d79   :  { %v1096_v41 = vpop.permute.xlu1 %1095 }
0x1d7a   :  { %v1098_v42 = vmul.f32 %v1096_v41, %v1079_v6 }
0x1d7c   :  { %1100 = vrot.lane.b32.xlu2 %v1098_v42, %s1545_s27 }
0x1dd6   :  { %v1101_v62 = vpop.permute.xlu2 %1100 }
0x1dd7   :  { %1103 = vst.msk [vmem:[#allocation2] sm:$0xff] %vm29_vm1, %v1101_v62 }
0x1dde   :  { %v1104_v43 = vld [vmem:[#allocation2] sm:$0xff] }
0x1ddf   :  { %1389 = vmatmul.msk.f32.vlgmr.msrb.gmra.mxu2 %vm27_vm0, %v1104_v43 }
0x1e62   :  { %v1125_v46 = vpop.f32.mrf.mxu2 }
0x1e63   :  { %v1126_v11 = vadd.f32 %v1990_v7, %v1125_v46 }
0x1e65   :  { %1513 = vtanh.f32 %v1126_v11  ;;  %v1390_v13 = vmul.f32 -1.442695, %v1126_v11 }
0x1e67   :  { %1515 = vpow2.f32 %v1390_v13 }
0x1e6b   :  { %v1514_v47 = vpop.eup %1513 }
0x1e6c   :  { %1150 = vrot.lane.b32.xlu0 %v1514_v47, %s1544_s18 }
0x1e6d   :  { %v1516_v48 = vpop.eup %1515 }
0x1e6e   :  { %v1131_v49 = vadd.f32 1.0, %v1516_v48  ;;  %v284_v48 = vld [vmem:[%s2101_s0] sm:$0xff] }
0x1e70   :  { %1517 = vrcp.f32 %v1131_v49  ;;  %v1143_v21 = vand.u32 2147483648, %v1131_v49  ;;  %vm1137_vm3 = vweird.f32 %v1131_v49  ;;  %v1141_v22 = vand.u32 2147483647, %v1131_v49 }
0x1e72   :  { %v1144_v25 = vor.u32 1.1754944e-38, %v1143_v21  ;;  %vm1142_vm5 = vcmp.eq.f32.partialorder %v1141_v22, 8.507059e+37 }
0x1e76   :  { %v1518_v15 = vpop.eup %1517 }
0x1e77   :  { %v1133_v16 = vmul.f32 %v1518_v15, %v1131_v49  ;;  %vm1138_vm2 = vweird.f32 %v1518_v15 }
0x1e78   :  { %vm1139_vm4 = vmor %vm1137_vm3, %vm1138_vm2 }
0x1e79   :  { %v1134_v18 = vsub.f32 1.0, %v1133_v16 }
0x1e7b   :  { %v1135_v19 = vmul.f32 %v1518_v15, %v1134_v18 }
0x1e7d   :  { %v1136_v53 = vadd.f32 %v1518_v15, %v1135_v19 }
0x1e7f   :  { %v1140_v26 = vsel %vm1139_vm4, %v1518_v15, %v1136_v53 }
0x1e80   :  { %v1145_v34 = vsel %vm1142_vm5, %v1144_v25, %v1140_v26 }
0x1e81   :  { %v1148_v37 = vmul.f32 %v1145_v34, %v1959_v35  ;;  %v128_v35 = vadd.f32 %v1942_v45, %v1638_v12 }
0x1ede   :  { %v1151_v27 = vpop.permute.xlu0 %1150 }
0x1edf   :  { %v1153_v36 = vmul.f32 %v1151_v27, %v1145_v34 }
0x1ee1   :  { %1155 = vrot.lane.b32.xlu1 %v1153_v36, %s1544_s18  ;;  %v1397_v36 = vld [vmem:[%s2101_s0 + $0x38] sm:$0xff] }
0x1f53   :  { %v1156_v23 = vpop.permute.xlu1 %1155 }
0x1f54   :  { %v1996_v50 = vadd.f32 %v1156_v23, %v1148_v37 }
0x1f56   :  { %1519 = vtanh.f32 %v1996_v50 }
0x1f5c   :  { %v1520_v51 = vpop.eup %1519 }
0x1f5d   :  { %1161 = vrot.lane.b32.xlu2 %v1520_v51, %s1544_s18 }
0x1fb7   :  { %v1162_v3 = vpop.permute.xlu2 %1161 }
0x1fb8   :  { %v2000_v5 = vmul.f32 %v1162_v3, %v1145_v34  ;;  %v1361_v34 = vld [vmem:[%s2101_s0 + $0x8] sm:$0xff] }
0x1fba   :  { %1166 = vrot.lane.b32.xlu0 %v2000_v5, %s1546_s13 }
0x202c   :  { %v1167_v52 = vpop.permute.xlu0 %1166 }
0x202d   :  { %1169 = vst.msk [vmem:[#allocation2] sm:$0xff] %vm282_vm10, %v1167_v52 }
0x2034   :  { %v1185_v8 = vld [vmem:[#allocation2] sm:$0xff] }
0x2035   :  { %1393 = vmatmul.msk.f32.vlgmr.msra.gmra.mxu3 %vm29_vm1, %v1185_v8 }
0x20b8   :  { %v1206_v54 = vpop.f32.mrf.mxu3 }
0x20b9   :  { %v1209_v10 = vadd.f32 %v1206_v54, %v128_v35 }
0x20bb   :  { %1521 = vtanh.f32 %v1209_v10  ;;  %v1394_v55 = vmul.f32 -1.442695, %v1209_v10 }
0x20bd   :  { %1523 = vpow2.f32 %v1394_v55 }
0x20c1   :  { %v1522_v14 = vpop.eup %1521 }
0x20c2   :  { %1232 = vrot.lane.b32.xlu1 %v1522_v14, %s1544_s18 }
0x20c3   :  { %v1524_v57 = vpop.eup %1523 }
0x20c4   :  { %v1213_v58 = vadd.f32 1.0, %v1524_v57 }
0x20c6   :  { %1525 = vrcp.f32 %v1213_v58  ;;  %v1225_v2 = vand.u32 2147483648, %v1213_v58  ;;  %vm1219_vm7 = vweird.f32 %v1213_v58  ;;  %v1223_v12 = vand.u32 2147483647, %v1213_v58 }
0x20c8   :  { %v1226_v4 = vor.u32 1.1754944e-38, %v1225_v2  ;;  %vm1224_vm9 = vcmp.eq.f32.partialorder %v1223_v12, 8.507059e+37 }
0x20cc   :  { %v1526_v59 = vpop.eup %1525 }
0x20cd   :  { %v1215_v60 = vmul.f32 %v1526_v59, %v1213_v58  ;;  %vm1220_vm6 = vweird.f32 %v1526_v59 }
0x20ce   :  { %vm1221_vm8 = vmor %vm1219_vm7, %vm1220_vm6 }
0x20cf   :  { %v1216_v61 = vsub.f32 1.0, %v1215_v60 }
0x20d1   :  { %v1217_v38 = vmul.f32 %v1526_v59, %v1216_v61 }
0x20d3   :  { %v1218_v0 = vadd.f32 %v1526_v59, %v1217_v38 }
0x20d5   :  { %v1222_v45 = vsel %vm1221_vm8, %v1526_v59, %v1218_v0 }
0x20d6   :  { %v1227_v56 = vsel %vm1224_vm9, %v1226_v4, %v1222_v45 }
0x20d7   :  { %v1230_v9 = vmul.f32 %v1227_v56, %v1980_v63 }
0x2134   :  { %v1233_v6 = vpop.permute.xlu1 %1232 }
0x2135   :  { %v1235_v1 = vmul.f32 %v1233_v6, %v1227_v56 }
0x2137   :  { %1237 = vrot.lane.b32.xlu2 %v1235_v1, %s1544_s18 }
0x2191   :  { %v1238_v40 = vpop.permute.xlu2 %1237 }
0x2192   :  { %v2011_v41 = vadd.f32 %v1238_v40, %v1230_v9 }
0x2194   :  { %1527 = vtanh.f32 %v2011_v41 }
0x219a   :  { %v1528_v42 = vpop.eup %1527 }
0x219b   :  { %1243 = vrot.lane.b32.xlu0 %v1528_v42, %s1544_s18 }
0x220d   :  { %v1244_v62 = vpop.permute.xlu0 %1243 }
0x220e   :  { %v1246_v43 = vmul.f32 %v1244_v62, %v1227_v56 }
0x2210   :  { %1248 = vrot.lane.b32.xlu1 %v1246_v43, %s1545_s27 }
0x2218   :  { %581 = vrot.lane.b32.xlu1 %v1805_v29, %s1545_s27 }
0x2282   :  { %v1249_v46 = vpop.permute.xlu1 %1248 }
0x2283   :  { %1251 = vst.msk [vmem:[#allocation2] sm:$0xff] %vm29_vm1, %v1249_v46 }
0x228a   :  { %v1252_v11 = vld [vmem:[#allocation2] sm:$0xff]  ;;  %v582_v37 = vpop.permute.xlu1 %581 }
0x228b   :  { %1395 = vmatmul.msk.f32.vlgmr.msrb.gmra.mxu0 %vm27_vm0, %v1252_v11  ;;  %v584_v23 = vadd.f32 %v582_v37, %v1842_v17 }
0x2308   :  { %v1273_v63 = vpop.f32.mrf.mxu0 }
0x2309   :  { %v1274_v47 = vadd.f32 %v1990_v7, %v1273_v63 }
0x230b   :  { %1529 = vtanh.f32 %v1274_v47  ;;  %v1396_v29 = vmul.f32 -1.442695, %v1274_v47 }
0x230d   :  { %1531 = vpow2.f32 %v1396_v29 }
0x2311   :  { %v1530_v13 = vpop.eup %1529 }
0x2312   :  { %1298 = vrot.lane.b32.xlu2 %v1530_v13, %s1544_s18 }
0x2313   :  { %v1532_v49 = vpop.eup %1531 }
0x2314   :  { %v1279_v7 = vadd.f32 1.0, %v1532_v49 }
0x2316   :  { %1533 = vrcp.f32 %v1279_v7  ;;  %v1291_v21 = vand.u32 2147483648, %v1279_v7  ;;  %vm1285_vm11 = vweird.f32 %v1279_v7  ;;  %v1289_v22 = vand.u32 2147483647, %v1279_v7 }
0x2318   :  { %vm1290_vm13 = vcmp.eq.f32.partialorder %v1289_v22, 8.507059e+37 }
0x231a   :  { %286 = vrot.lane.b32.xlu2 %v284_v48, %s1545_s27 }
0x231c   :  { %v1534_v15 = vpop.eup %1533 }
0x231d   :  { %v1281_v16 = vmul.f32 %v1534_v15, %v1279_v7  ;;  %vm1286_vm0 = vweird.f32 %v1534_v15 }
0x231e   :  { %vm1287_vm12 = vmor %vm1285_vm11, %vm1286_vm0 }
0x231f   :  { %v1282_v18 = vsub.f32 1.0, %v1281_v16 }
0x2321   :  { %v1283_v19 = vmul.f32 %v1534_v15, %v1282_v18 }
0x2322   :  { %729 = vrot.lane.b32.xlu2 %v1849_v30, %s1545_s27  ;;  %v1292_v30 = vor.u32 1.1754944e-38, %v1291_v21 }
0x2323   :  { %v1284_v53 = vadd.f32 %v1534_v15, %v1283_v19 }
0x2325   :  { %v1288_v26 = vsel %vm1287_vm12, %v1534_v15, %v1284_v53 }
0x232a   :  { %1173 = vrot.lane.b32.xlu2 %v1970_v44, %s1545_s27  ;;  %v1293_v44 = vsel %vm1290_vm13, %v1292_v30, %v1288_v26 }
0x232b   :  { %v1296_v51 = vmul.f32 %v1293_v44, %v1996_v50 }
0x236c   :  { %v1299_v25 = vpop.permute.xlu2 %1298 }
0x236d   :  { %v1301_v27 = vmul.f32 %v1299_v25, %v1293_v44 }
0x236f   :  { %1303 = vrot.lane.b32.xlu0 %v1301_v27, %s1544_s18 }
0x2374   :  { %v287_v10 = vpop.permute.xlu2 %286 }
0x2375   :  { %v289_v17 = vadd.f32 %v287_v10, %v1757_v20 }
0x2377   :  { %433 = vrot.lane.b32.xlu0 %v1361_v34, %s1545_s27 }
0x237c   :  { %v730_v55 = vpop.permute.xlu2 %729 }
0x237f   :  { %877 = vrot.lane.b32.xlu0 %v1885_v33, %s1545_s27 }
0x2387   :  { %1321 = vrot.lane.b32.xlu0 %v1397_v36, %s1545_s27 }
0x238f   :  { %586 = vrot.lane.b32.xlu0 %v584_v23, %s1545_s27 }
0x23e1   :  { %v1304_v3 = vpop.permute.xlu0 %1303 }
0x23e2   :  { %v1306_v52 = vadd.f32 %v1304_v3, %v1296_v51 }
0x23e4   :  { %1535 = vtanh.f32 %v1306_v52 }
0x23e9   :  { %v434_v8 = vpop.permute.xlu0 %433 }
0x23ea   :  { %v1536_v35 = vpop.eup %1535  ;;  %v436_v33 = vadd.f32 %v434_v8, %v1798_v28  ;;  %v732_v28 = vadd.f32 %v730_v55, %v1878_v32 }
0x23eb   :  { %1309 = vrot.lane.b32.xlu1 %v1536_v35, %s1544_s18 }
0x23ec   :  { %438 = vrot.lane.b32.xlu2 %v436_v33, %s1545_s27 }
0x23f1   :  { %v878_v54 = vpop.permute.xlu0 %877 }
0x23f2   :  { %v880_v14 = vadd.f32 %v878_v54, %v1914_v31  ;;  %v1174_v31 = vpop.permute.xlu2 %1173 }
0x23f3   :  { %1025 = vrot.lane.b32.xlu1 %v1921_v24, %s1545_s27  ;;  %v1176_v24 = vadd.f32 %v1174_v31, %v2000_v5 }
0x23f4   :  { %882 = vrot.lane.b32.xlu2 %v880_v14, %s1545_s27 }
0x23f9   :  { %v1322_v50 = vpop.permute.xlu0 %1321 }
0x23fb   :  { %291 = vrot.lane.b32.xlu1 %v289_v17, %s1545_s27 }
0x2401   :  { %v587_v57 = vpop.permute.xlu0 %586 }
0x2402   :  { %1368 = vst.msk [vmem:[%s2105_s6 + $0x10] sm:$0xff] %vm29_vm1, %v587_v57 }
0x2403   :  { %734 = vrot.lane.b32.xlu1 %v732_v28, %s1545_s27 }
0x240b   :  { %1178 = vrot.lane.b32.xlu1 %v1176_v24, %s1545_s27 }
0x2413   :  { %1332 = vrot.lane.b32.xlu1 %v2011_v41, %s1546_s13 }
0x2446   :  { %v439_v20 = vpop.permute.xlu2 %438 }
0x2447   :  { %1362 = vst.msk [vmem:[%s2105_s6 + $0x8] sm:$0xff] %vm29_vm1, %v439_v20 }
0x244e   :  { %v883_v32 = vpop.permute.xlu2 %882 }
0x244f   :  { %1380 = vst.msk [vmem:[%s2105_s6 + $0x20] sm:$0xff] %vm29_vm1, %v883_v32 }
0x245d   :  { %v1310_v58 = vpop.permute.xlu1 %1309 }
0x245e   :  { %v1312_v59 = vmul.f32 %v1310_v58, %v1293_v44 }
0x2460   :  { %1314 = vrot.lane.b32.xlu2 %v1312_v59, %s1546_s13  ;;  %v1324_v38 = vadd.f32 %v1322_v50, %v1312_v59 }
0x2465   :  { %v1026_v5 = vpop.permute.xlu1 %1025 }
0x2466   :  { %v1028_v60 = vadd.f32 %v1026_v5, %v1963_v39 }
0x2468   :  { %1337 = vrot.lane.b32.xlu2 %v1306_v52, %s1546_s13  ;;  %1030 = vrot.lane.b32.xlu0 %v1028_v60, %s1545_s27 }
0x246d   :  { %v292_v61 = vpop.permute.xlu1 %291 }
0x246e   :  { %294 = vst.msk [vmem:[%s2105_s6] sm:$0xff] %vm29_vm1, %v292_v61 }
0x2470   :  { %1326 = vrot.lane.b32.xlu0 %v1324_v38, %s1545_s27 }
0x2475   :  { %v735_v0 = vpop.permute.xlu1 %734 }
0x2476   :  { %1374 = vst.msk [vmem:[%s2105_s6 + $0x18] sm:$0xff] %vm29_vm1, %v735_v0 }
0x247d   :  { %v1179_v39 = vpop.permute.xlu1 %1178 }
0x247e   :  { %1392 = vst.msk [vmem:[%s2105_s6 + $0x30] sm:$0xff] %vm29_vm1, %v1179_v39 }
0x2485   :  { %v1333_v2 = vpop.permute.xlu1 %1332 }
0x2486   :  { %1335 = vst.msk [vmem:[#allocation3] sm:$0xff] %vm29_vm1, %v1333_v2 }
0x24ba   :  { %v1315_v12 = vpop.permute.xlu2 %1314 }
0x24bb   :  { %1317 = vst.msk [vmem:[#allocation2] sm:$0xff] %vm282_vm10, %v1315_v12 }
0x24c2   :  { %v1338_v45 = vpop.permute.xlu2 %1337 }
0x24c3   :  { %1340 = vst.msk [vmem:[#allocation4] sm:$0xff] %vm29_vm1, %v1338_v45 }
0x24da   :  { %v1031_v4 = vpop.permute.xlu0 %1030 }
0x24db   :  { %1386 = vst.msk [vmem:[%s2105_s6 + $0x28] sm:$0xff] %vm29_vm1, %v1031_v4 }
0x24e2   :  { %v1327_v6 = vpop.permute.xlu0 %1326 }
0x24e3   :  { %1398 = vst.msk [vmem:[%s2105_s6 + $0x38] sm:$0xff] %vm29_vm1, %v1327_v6 }

</bundles_post_ra>
